<compile_context>
chip_gen: v7x
topology: tpu7x:2x2x1
jax: 0.10.0
libtpu: 0.0.40
codegen_flags: <defaults>
</compile_context>

<pallas_src>
import numpy as np

import jax
import jax.numpy as jnp
from jax.experimental import pallas as pl
from jax.experimental.pallas import tpu as pltpu

N_ACTIONS = 12           # value head width (as in the PyTorch QNet)
N_ADV = 1                # advantage head width (as in the PyTorch QNet)
HEAD_HIDDEN = 512
Q_LANES = 128            # q row padded to a full 128-lane store

_VMEM_LIMIT_BYTES = 32 * 1024 * 1024
_CONV_CFG = ((8, 4, 32), (4, 2, 64), (3, 1, 64))    # (kernel, stride, out_ch)


def _conv_out(n, k, s):
    return (n - k) // s + 1


def _elu(a):
    # ELU(alpha=1): x if x > 0 else exp(x) - 1 (clamp exp arg for safety).
    return jnp.where(a > 0, a, jnp.exp(jnp.minimum(a, 0.0)) - 1.0)


# ----------------------------------------------------------------------------
# The single fused Pallas kernel (one batch element per grid step)
# ----------------------------------------------------------------------------
def _qnet_fused_kernel(x_ref,
                       g1_ref, mf1_ref, br1_ref,
                       g2_ref, mf2_ref, br2_ref,
                       g3_ref, mf3_ref, br3_ref,
                       hw1_ref, hb1_ref, hw2_ref, hb2_ref,
                       q_ref):
    """Everything below stays in VMEM; activations are (rows, width*channels)."""

    def conv_elu(act, g_ref, mf_ref, br_ref):
        k = g_ref.shape[0]
        ho = g_ref.shape[1]
        out_lanes = mf_ref.shape[2]
        acc = jnp.zeros((ho, out_lanes), jnp.float32)
        for di in range(k):                              # static unroll (k <= 8)
            rows = jnp.dot(g_ref[di], act,               # 0/1 gather -> exact copy
                           preferred_element_type=jnp.float32)
            acc = acc + jnp.dot(rows.astype(jnp.bfloat16), mf_ref[di],
                                preferred_element_type=jnp.float32)
        return _elu(acc + br_ref[...]).astype(jnp.bfloat16)

    act = x_ref[...]                                     # (H,  W*C)    bf16
    act = conv_elu(act, g1_ref, mf1_ref, br1_ref)        # (H1, W1*32)  bf16
    act = conv_elu(act, g2_ref, mf2_ref, br2_ref)        # (H2, W2*64)  bf16
    act = conv_elu(act, g3_ref, mf3_ref, br3_ref)        # (H3, W3*64)  bf16

    # FC head -- value branch only: with a width-1 advantage head the dueling
    # combine cancels exactly (q = v + adv - mean(adv) == v), so the advantage
    # branch is dead compute (equality verified against the full reference).
    hidden = hw1_ref.shape[2]
    hacc = jnp.zeros((1, hidden), jnp.float32)
    for r in range(hw1_ref.shape[0]):                    # static unroll over H3 rows
        hacc = hacc + jnp.dot(act[r:r + 1, :], hw1_ref[r],
                              preferred_element_type=jnp.float32)
    h = _elu(hacc + hb1_ref[...]).astype(jnp.bfloat16)
    q = jnp.dot(h, hw2_ref[...], preferred_element_type=jnp.float32)
    q_ref[...] = q + hb2_ref[...]                        # (1, 128) lane-dense f32


# ----------------------------------------------------------------------------
# Parameters (PyTorch-layout) and packed kernel operands
# ----------------------------------------------------------------------------
def init_qnet_params(key, input_dim):
    """Original-form parameters (HWIO conv weights, f32), like the PyTorch QNet."""
    C, H, W = input_dim
    h, w, cin = H, W, C
    for k, s, oc in _CONV_CFG:
        h, w, cin = _conv_out(h, k, s), _conv_out(w, k, s), oc
    flat = cin * h * w

    def uinit(k_, shape, fan_in):
        bound = 1.0 / float(np.sqrt(fan_in))
        return jax.random.uniform(k_, shape, jnp.float32, -bound, bound)

    ks = jax.random.split(key, 14)
    p = {}
    cin = C
    for i, (k, s, oc) in enumerate(_CONV_CFG):
        fan = cin * k * k
        p[f"cw{i + 1}"] = uinit(ks[2 * i], (k, k, cin, oc), fan)      # HWIO
        p[f"cb{i + 1}"] = uinit(ks[2 * i + 1], (oc,), fan)
        cin = oc
    p["vw1"] = uinit(ks[6], (flat, HEAD_HIDDEN), flat)
    p["vb1"] = uinit(ks[7], (HEAD_HIDDEN,), flat)
    p["vw2"] = uinit(ks[8], (HEAD_HIDDEN, N_ACTIONS), HEAD_HIDDEN)
    p["vb2"] = uinit(ks[9], (N_ACTIONS,), HEAD_HIDDEN)
    p["aw1"] = uinit(ks[10], (flat, HEAD_HIDDEN), flat)
    p["ab1"] = uinit(ks[11], (HEAD_HIDDEN,), flat)
    p["aw2"] = uinit(ks[12], (HEAD_HIDDEN, N_ADV), HEAD_HIDDEN)
    p["ab2"] = uinit(ks[13], (N_ADV,), HEAD_HIDDEN)
    return p


def pack_qnet_operands(params, input_dim):
    """Precompute the VMEM-resident kernel operands (done once, host-side).

    Per conv layer (kernel k, stride s, HWIO weights W, input (Hi, Wi, Cin)):
      g  : (k, Ho, Hi)             bf16 0/1 row gather, g[di, ho, ho*s+di] = 1
      mf : (k, Wi*Cin, Wo*Cout)    bf16 width-Toeplitz fold,
           mf[di, w*Cin + c, wo*Cout + co] = W[di, w - wo*s, c, co] (else 0)
      br : (1, Wo*Cout)            f32 bias row (bias tiled over wo)
    Head keeps only the value branch; its 2nd matmul is padded to 128 lanes.
    """
    C, H, W = input_dim
    bf = jnp.bfloat16
    ops = {}
    cin, hi, wi = C, H, W
    for i, (k, s, oc) in enumerate(_CONV_CFG):
        ho, wo = _conv_out(hi, k, s), _conv_out(wi, k, s)
        w_np = np.asarray(params[f"cw{i + 1}"], np.float32)     # (k, k, cin, oc)
        g = np.zeros((k, ho, hi), np.float32)
        for di in range(k):
            for r in range(ho):
                g[di, r, r * s + di] = 1.0
        mf = np.zeros((k, wi * cin, wo * oc), np.float32)
        for dj in range(k):
            for wo_ in range(wo):
                wcol = wo_ * s + dj
                mf[:, wcol * cin:(wcol + 1) * cin,
                   wo_ * oc:(wo_ + 1) * oc] = w_np[:, dj]
        b = np.asarray(params[f"cb{i + 1}"], np.float32).reshape(1, oc)
        ops[f"g{i + 1}"] = jnp.asarray(g, bf)
        ops[f"mf{i + 1}"] = jnp.asarray(mf, bf)
        ops[f"br{i + 1}"] = jnp.asarray(np.tile(b, (1, wo)), jnp.float32)
        cin, hi, wi = oc, ho, wo

    h3, w3, c3 = hi, wi, cin
    # hw1 stored (H3, W3*C3, 512): the kernel consumes the (H3, W3*C3) feature
    # map row-by-row, so no flatten/reshape is ever needed inside the kernel.
    ops["hw1"] = params["vw1"].astype(bf).reshape(h3, w3 * c3, HEAD_HIDDEN)
    ops["hb1"] = params["vb1"].reshape(1, HEAD_HIDDEN).astype(jnp.float32)
    ops["hw2"] = jnp.zeros((HEAD_HIDDEN, Q_LANES), bf).at[:, :N_ACTIONS].set(
        params["vw2"].astype(bf))
    ops["hb2"] = jnp.zeros((1, Q_LANES), jnp.float32).at[:, :N_ACTIONS].set(
        params["vb2"].reshape(1, N_ACTIONS))
    return ops


_OPERAND_KEYS = ("g1", "mf1", "br1", "g2", "mf2", "br2",
                 "g3", "mf3", "br3", "hw1", "hb1", "hw2", "hb2")


def _const_index_map(ndim):
    zeros = (0,) * ndim
    return lambda b: zeros


# ----------------------------------------------------------------------------
# Forward (one pallas_call) and pure-JAX reference
# ----------------------------------------------------------------------------
def qnet_forward(ops, x):
    """Fused Pallas forward: x (B, C, H, W) or (C, H, W) f32 -> q (B, 12) f32."""
    if x.ndim == 3:
        x = x[None]                                             # unsqueeze(0)
    B, C, H, W = x.shape
    # Single layout change on the raw input (NCHW -> rows x (width*channels)).
    x2d = jnp.transpose(x, (0, 2, 3, 1)).reshape(B, H, W * C).astype(jnp.bfloat16)

    weight_specs = [
        pl.BlockSpec(ops[k].shape, _const_index_map(ops[k].ndim))
        for k in _OPERAND_KEYS
    ]
    q_pad = pl.pallas_call(
        _qnet_fused_kernel,
        out_shape=jax.ShapeDtypeStruct((B, 1, Q_LANES), jnp.float32),
        grid=(B,),
        in_specs=[pl.BlockSpec((None, H, W * C), lambda b: (b, 0, 0))]
                 + weight_specs,
        out_specs=pl.BlockSpec((None, 1, Q_LANES), lambda b: (b, 0, 0)),
        compiler_params=pltpu.CompilerParams(
            dimension_semantics=("parallel",),       # batch across TCs (v7x)
            vmem_limit_bytes=_VMEM_LIMIT_BYTES),
    )(x2d, *(ops[k] for k in _OPERAND_KEYS))
    return q_pad[:, 0, :N_ACTIONS]


def qnet_forward_ref(params, x):
    """Pure-JAX reference: faithful PyTorch QNet.forward (both heads + dueling
    combine), same bf16-operand / f32-accumulate policy as the kernel."""
    if x.ndim == 3:
        x = x[None]
    a = jnp.transpose(x, (0, 2, 3, 1)).astype(jnp.bfloat16)     # NHWC

    for i, (k, s, oc) in enumerate(_CONV_CFG):
        y = jax.lax.conv_general_dilated(
            a, params[f"cw{i + 1}"].astype(jnp.bfloat16), (s, s), "VALID",
            dimension_numbers=("NHWC", "HWIO", "NHWC"),
            preferred_element_type=jnp.float32)
        a = _elu(y + params[f"cb{i + 1}"].reshape(1, 1, 1, -1)).astype(jnp.bfloat16)

    feat = a.reshape(a.shape[0], -1)                            # (B, flat)

    def branch(w1, b1, w2, b2):
        h = _elu(jnp.dot(feat, w1.astype(jnp.bfloat16),
                         preferred_element_type=jnp.float32) + b1)
        return jnp.dot(h.astype(jnp.bfloat16), w2.astype(jnp.bfloat16),
                       preferred_element_type=jnp.float32) + b2

    v = branch(params["vw1"], params["vb1"], params["vw2"], params["vb2"])
    adv = branch(params["aw1"], params["ab1"], params["aw2"], params["ab2"])
    return v + adv - jnp.mean(adv, axis=1, keepdims=True)


# ----------------------------------------------------------------------------
if __name__ == "__main__":
    # Smallest spatial size admitted by the 8/4 -> 4/2 -> 3/1 conv stack is 36.
    input_dim = (4, 36, 36)
    batch = 4                     # >= 2 grid steps so both v7x TensorCores engage

    key = jax.random.PRNGKey(0)
    pkey, xkey = jax.random.split(key)
    params = init_qnet_params(pkey, input_dim)
    ops = pack_qnet_operands(params, input_dim)
    x = jax.random.normal(xkey, (batch, *input_dim), dtype=jnp.float32)

    q = jax.block_until_ready(qnet_forward(ops, x))
    q_ref = jax.block_until_ready(qnet_forward_ref(params, x))

    assert q.shape == (batch, N_ACTIONS), q.shape
    max_diff = float(jnp.max(jnp.abs(q - q_ref)))
    assert jnp.allclose(q, q_ref, rtol=2e-3, atol=2e-3), (
        f"mismatch vs reference: max|diff|={max_diff}")

    print("KERNEL_OK")
</pallas_src>

<mosaic_0001>
module attributes {stable_mosaic.version = 11 : i64} {
  func.func @_qnet_fused_kernel(%arg0: i32, %arg1: memref<1x36x144xbf16, #tpu.memory_space<vmem>>, %arg2: memref<8x8x36xbf16, #tpu.memory_space<vmem>>, %arg3: memref<8x144x256xbf16, #tpu.memory_space<vmem>>, %arg4: memref<1x256xf32, #tpu.memory_space<vmem>>, %arg5: memref<4x3x8xbf16, #tpu.memory_space<vmem>>, %arg6: memref<4x256x192xbf16, #tpu.memory_space<vmem>>, %arg7: memref<1x192xf32, #tpu.memory_space<vmem>>, %arg8: memref<3x1x3xbf16, #tpu.memory_space<vmem>>, %arg9: memref<3x192x64xbf16, #tpu.memory_space<vmem>>, %arg10: memref<1x64xf32, #tpu.memory_space<vmem>>, %arg11: memref<1x64x512xbf16, #tpu.memory_space<vmem>>, %arg12: memref<1x512xf32, #tpu.memory_space<vmem>>, %arg13: memref<512x128xbf16, #tpu.memory_space<vmem>>, %arg14: memref<1x128xf32, #tpu.memory_space<vmem>>, %arg15: memref<1x1x128xf32, #tpu.memory_space<vmem>>) attributes {dimension_semantics = [#tpu.dimension_semantics<parallel>], iteration_bounds = array<i64: 4>, scalar_prefetch = 0 : i64, scratch_operands = 0 : i64, tpu.core_type = #tpu.core_type<tc>, window_params = [{transform_indices = @transform_0, window_bounds = array<i64: 1, 36, 144>}, {pipeline_mode = #tpu.pipeline_mode<synchronous>, transform_indices = @transform_1, window_bounds = array<i64: 8, 8, 36>}, {pipeline_mode = #tpu.pipeline_mode<synchronous>, transform_indices = @transform_2, window_bounds = array<i64: 8, 144, 256>}, {pipeline_mode = #tpu.pipeline_mode<synchronous>, transform_indices = @transform_3, window_bounds = array<i64: 1, 256>}, {pipeline_mode = #tpu.pipeline_mode<synchronous>, transform_indices = @transform_4, window_bounds = array<i64: 4, 3, 8>}, {pipeline_mode = #tpu.pipeline_mode<synchronous>, transform_indices = @transform_5, window_bounds = array<i64: 4, 256, 192>}, {pipeline_mode = #tpu.pipeline_mode<synchronous>, transform_indices = @transform_6, window_bounds = array<i64: 1, 192>}, {pipeline_mode = #tpu.pipeline_mode<synchronous>, transform_indices = @transform_7, window_bounds = array<i64: 3, 1, 3>}, {pipeline_mode = #tpu.pipeline_mode<synchronous>, transform_indices = @transform_8, window_bounds = array<i64: 3, 192, 64>}, {pipeline_mode = #tpu.pipeline_mode<synchronous>, transform_indices = @transform_9, window_bounds = array<i64: 1, 64>}, {pipeline_mode = #tpu.pipeline_mode<synchronous>, transform_indices = @transform_10, window_bounds = array<i64: 1, 64, 512>}, {pipeline_mode = #tpu.pipeline_mode<synchronous>, transform_indices = @transform_11, window_bounds = array<i64: 1, 512>}, {pipeline_mode = #tpu.pipeline_mode<synchronous>, transform_indices = @transform_12, window_bounds = array<i64: 512, 128>}, {pipeline_mode = #tpu.pipeline_mode<synchronous>, transform_indices = @transform_13, window_bounds = array<i64: 1, 128>}, {transform_indices = @transform_14, window_bounds = array<i64: 1, 1, 128>}]} {
    %c0 = arith.constant 0 : index
    %c0_0 = arith.constant 0 : index
    %c0_1 = arith.constant 0 : index
    %0 = vector.load %arg1[%c0, %c0_0, %c0_1] : memref<1x36x144xbf16, #tpu.memory_space<vmem>>, vector<1x36x144xbf16>
    %1 = vector.shape_cast %0 : vector<1x36x144xbf16> to vector<36x144xbf16>
    %cst = arith.constant 0.000000e+00 : f32
    %2 = vector.broadcast %cst : f32 to vector<8x256xf32>
    %c0_2 = arith.constant 0 : index
    %c0_3 = arith.constant 0 : index
    %c0_4 = arith.constant 0 : index
    %3 = vector.load %arg2[%c0_2, %c0_3, %c0_4] : memref<8x8x36xbf16, #tpu.memory_space<vmem>>, vector<1x8x36xbf16>
    %4 = vector.shape_cast %3 : vector<1x8x36xbf16> to vector<8x36xbf16>
    %cst_5 = arith.constant dense<0.000000e+00> : vector<8x144xf32>
    %5 = tpu.matmul %4, %1, %cst_5 {dimension_numbers = #tpu.dot_dimension_numbers<[1], [0], [0], [1], [0, 0, 1, 1], [], []>} : vector<8x36xbf16>, vector<36x144xbf16>, vector<8x144xf32> -> vector<8x144xf32>
    %6 = arith.truncf %5 : vector<8x144xf32> to vector<8x144xbf16>
    %c0_6 = arith.constant 0 : index
    %c0_7 = arith.constant 0 : index
    %c0_8 = arith.constant 0 : index
    %7 = vector.load %arg3[%c0_6, %c0_7, %c0_8] : memref<8x144x256xbf16, #tpu.memory_space<vmem>>, vector<1x144x256xbf16>
    %8 = vector.shape_cast %7 : vector<1x144x256xbf16> to vector<144x256xbf16>
    %cst_9 = arith.constant dense<0.000000e+00> : vector<8x256xf32>
    %9 = tpu.matmul %6, %8, %cst_9 {dimension_numbers = #tpu.dot_dimension_numbers<[1], [0], [0], [1], [0, 0, 1, 1], [], []>} : vector<8x144xbf16>, vector<144x256xbf16>, vector<8x256xf32> -> vector<8x256xf32>
    %10 = arith.addf %2, %9 : vector<8x256xf32>
    %c1 = arith.constant 1 : index
    %c0_10 = arith.constant 0 : index
    %c0_11 = arith.constant 0 : index
    %11 = vector.load %arg2[%c1, %c0_10, %c0_11] : memref<8x8x36xbf16, #tpu.memory_space<vmem>>, vector<1x8x36xbf16>
    %12 = vector.shape_cast %11 : vector<1x8x36xbf16> to vector<8x36xbf16>
    %cst_12 = arith.constant dense<0.000000e+00> : vector<8x144xf32>
    %13 = tpu.matmul %12, %1, %cst_12 {dimension_numbers = #tpu.dot_dimension_numbers<[1], [0], [0], [1], [0, 0, 1, 1], [], []>} : vector<8x36xbf16>, vector<36x144xbf16>, vector<8x144xf32> -> vector<8x144xf32>
    %14 = arith.truncf %13 : vector<8x144xf32> to vector<8x144xbf16>
    %c1_13 = arith.constant 1 : index
    %c0_14 = arith.constant 0 : index
    %c0_15 = arith.constant 0 : index
    %15 = vector.load %arg3[%c1_13, %c0_14, %c0_15] : memref<8x144x256xbf16, #tpu.memory_space<vmem>>, vector<1x144x256xbf16>
    %16 = vector.shape_cast %15 : vector<1x144x256xbf16> to vector<144x256xbf16>
    %cst_16 = arith.constant dense<0.000000e+00> : vector<8x256xf32>
    %17 = tpu.matmul %14, %16, %cst_16 {dimension_numbers = #tpu.dot_dimension_numbers<[1], [0], [0], [1], [0, 0, 1, 1], [], []>} : vector<8x144xbf16>, vector<144x256xbf16>, vector<8x256xf32> -> vector<8x256xf32>
    %18 = arith.addf %10, %17 : vector<8x256xf32>
    %c2 = arith.constant 2 : index
    %c0_17 = arith.constant 0 : index
    %c0_18 = arith.constant 0 : index
    %19 = vector.load %arg2[%c2, %c0_17, %c0_18] : memref<8x8x36xbf16, #tpu.memory_space<vmem>>, vector<1x8x36xbf16>
    %20 = vector.shape_cast %19 : vector<1x8x36xbf16> to vector<8x36xbf16>
    %cst_19 = arith.constant dense<0.000000e+00> : vector<8x144xf32>
    %21 = tpu.matmul %20, %1, %cst_19 {dimension_numbers = #tpu.dot_dimension_numbers<[1], [0], [0], [1], [0, 0, 1, 1], [], []>} : vector<8x36xbf16>, vector<36x144xbf16>, vector<8x144xf32> -> vector<8x144xf32>
    %22 = arith.truncf %21 : vector<8x144xf32> to vector<8x144xbf16>
    %c2_20 = arith.constant 2 : index
    %c0_21 = arith.constant 0 : index
    %c0_22 = arith.constant 0 : index
    %23 = vector.load %arg3[%c2_20, %c0_21, %c0_22] : memref<8x144x256xbf16, #tpu.memory_space<vmem>>, vector<1x144x256xbf16>
    %24 = vector.shape_cast %23 : vector<1x144x256xbf16> to vector<144x256xbf16>
    %cst_23 = arith.constant dense<0.000000e+00> : vector<8x256xf32>
    %25 = tpu.matmul %22, %24, %cst_23 {dimension_numbers = #tpu.dot_dimension_numbers<[1], [0], [0], [1], [0, 0, 1, 1], [], []>} : vector<8x144xbf16>, vector<144x256xbf16>, vector<8x256xf32> -> vector<8x256xf32>
    %26 = arith.addf %18, %25 : vector<8x256xf32>
    %c3 = arith.constant 3 : index
    %c0_24 = arith.constant 0 : index
    %c0_25 = arith.constant 0 : index
    %27 = vector.load %arg2[%c3, %c0_24, %c0_25] : memref<8x8x36xbf16, #tpu.memory_space<vmem>>, vector<1x8x36xbf16>
    %28 = vector.shape_cast %27 : vector<1x8x36xbf16> to vector<8x36xbf16>
    %cst_26 = arith.constant dense<0.000000e+00> : vector<8x144xf32>
    %29 = tpu.matmul %28, %1, %cst_26 {dimension_numbers = #tpu.dot_dimension_numbers<[1], [0], [0], [1], [0, 0, 1, 1], [], []>} : vector<8x36xbf16>, vector<36x144xbf16>, vector<8x144xf32> -> vector<8x144xf32>
    %30 = arith.truncf %29 : vector<8x144xf32> to vector<8x144xbf16>
    %c3_27 = arith.constant 3 : index
    %c0_28 = arith.constant 0 : index
    %c0_29 = arith.constant 0 : index
    %31 = vector.load %arg3[%c3_27, %c0_28, %c0_29] : memref<8x144x256xbf16, #tpu.memory_space<vmem>>, vector<1x144x256xbf16>
    %32 = vector.shape_cast %31 : vector<1x144x256xbf16> to vector<144x256xbf16>
    %cst_30 = arith.constant dense<0.000000e+00> : vector<8x256xf32>
    %33 = tpu.matmul %30, %32, %cst_30 {dimension_numbers = #tpu.dot_dimension_numbers<[1], [0], [0], [1], [0, 0, 1, 1], [], []>} : vector<8x144xbf16>, vector<144x256xbf16>, vector<8x256xf32> -> vector<8x256xf32>
    %34 = arith.addf %26, %33 : vector<8x256xf32>
    %c4 = arith.constant 4 : index
    %c0_31 = arith.constant 0 : index
    %c0_32 = arith.constant 0 : index
    %35 = vector.load %arg2[%c4, %c0_31, %c0_32] : memref<8x8x36xbf16, #tpu.memory_space<vmem>>, vector<1x8x36xbf16>
    %36 = vector.shape_cast %35 : vector<1x8x36xbf16> to vector<8x36xbf16>
    %cst_33 = arith.constant dense<0.000000e+00> : vector<8x144xf32>
    %37 = tpu.matmul %36, %1, %cst_33 {dimension_numbers = #tpu.dot_dimension_numbers<[1], [0], [0], [1], [0, 0, 1, 1], [], []>} : vector<8x36xbf16>, vector<36x144xbf16>, vector<8x144xf32> -> vector<8x144xf32>
    %38 = arith.truncf %37 : vector<8x144xf32> to vector<8x144xbf16>
    %c4_34 = arith.constant 4 : index
    %c0_35 = arith.constant 0 : index
    %c0_36 = arith.constant 0 : index
    %39 = vector.load %arg3[%c4_34, %c0_35, %c0_36] : memref<8x144x256xbf16, #tpu.memory_space<vmem>>, vector<1x144x256xbf16>
    %40 = vector.shape_cast %39 : vector<1x144x256xbf16> to vector<144x256xbf16>
    %cst_37 = arith.constant dense<0.000000e+00> : vector<8x256xf32>
    %41 = tpu.matmul %38, %40, %cst_37 {dimension_numbers = #tpu.dot_dimension_numbers<[1], [0], [0], [1], [0, 0, 1, 1], [], []>} : vector<8x144xbf16>, vector<144x256xbf16>, vector<8x256xf32> -> vector<8x256xf32>
    %42 = arith.addf %34, %41 : vector<8x256xf32>
    %c5 = arith.constant 5 : index
    %c0_38 = arith.constant 0 : index
    %c0_39 = arith.constant 0 : index
    %43 = vector.load %arg2[%c5, %c0_38, %c0_39] : memref<8x8x36xbf16, #tpu.memory_space<vmem>>, vector<1x8x36xbf16>
    %44 = vector.shape_cast %43 : vector<1x8x36xbf16> to vector<8x36xbf16>
    %cst_40 = arith.constant dense<0.000000e+00> : vector<8x144xf32>
    %45 = tpu.matmul %44, %1, %cst_40 {dimension_numbers = #tpu.dot_dimension_numbers<[1], [0], [0], [1], [0, 0, 1, 1], [], []>} : vector<8x36xbf16>, vector<36x144xbf16>, vector<8x144xf32> -> vector<8x144xf32>
    %46 = arith.truncf %45 : vector<8x144xf32> to vector<8x144xbf16>
    %c5_41 = arith.constant 5 : index
    %c0_42 = arith.constant 0 : index
    %c0_43 = arith.constant 0 : index
    %47 = vector.load %arg3[%c5_41, %c0_42, %c0_43] : memref<8x144x256xbf16, #tpu.memory_space<vmem>>, vector<1x144x256xbf16>
    %48 = vector.shape_cast %47 : vector<1x144x256xbf16> to vector<144x256xbf16>
    %cst_44 = arith.constant dense<0.000000e+00> : vector<8x256xf32>
    %49 = tpu.matmul %46, %48, %cst_44 {dimension_numbers = #tpu.dot_dimension_numbers<[1], [0], [0], [1], [0, 0, 1, 1], [], []>} : vector<8x144xbf16>, vector<144x256xbf16>, vector<8x256xf32> -> vector<8x256xf32>
    %50 = arith.addf %42, %49 : vector<8x256xf32>
    %c6 = arith.constant 6 : index
    %c0_45 = arith.constant 0 : index
    %c0_46 = arith.constant 0 : index
    %51 = vector.load %arg2[%c6, %c0_45, %c0_46] : memref<8x8x36xbf16, #tpu.memory_space<vmem>>, vector<1x8x36xbf16>
    %52 = vector.shape_cast %51 : vector<1x8x36xbf16> to vector<8x36xbf16>
    %cst_47 = arith.constant dense<0.000000e+00> : vector<8x144xf32>
    %53 = tpu.matmul %52, %1, %cst_47 {dimension_numbers = #tpu.dot_dimension_numbers<[1], [0], [0], [1], [0, 0, 1, 1], [], []>} : vector<8x36xbf16>, vector<36x144xbf16>, vector<8x144xf32> -> vector<8x144xf32>
    %54 = arith.truncf %53 : vector<8x144xf32> to vector<8x144xbf16>
    %c6_48 = arith.constant 6 : index
    %c0_49 = arith.constant 0 : index
    %c0_50 = arith.constant 0 : index
    %55 = vector.load %arg3[%c6_48, %c0_49, %c0_50] : memref<8x144x256xbf16, #tpu.memory_space<vmem>>, vector<1x144x256xbf16>
    %56 = vector.shape_cast %55 : vector<1x144x256xbf16> to vector<144x256xbf16>
    %cst_51 = arith.constant dense<0.000000e+00> : vector<8x256xf32>
    %57 = tpu.matmul %54, %56, %cst_51 {dimension_numbers = #tpu.dot_dimension_numbers<[1], [0], [0], [1], [0, 0, 1, 1], [], []>} : vector<8x144xbf16>, vector<144x256xbf16>, vector<8x256xf32> -> vector<8x256xf32>
    %58 = arith.addf %50, %57 : vector<8x256xf32>
    %c7 = arith.constant 7 : index
    %c0_52 = arith.constant 0 : index
    %c0_53 = arith.constant 0 : index
    %59 = vector.load %arg2[%c7, %c0_52, %c0_53] : memref<8x8x36xbf16, #tpu.memory_space<vmem>>, vector<1x8x36xbf16>
    %60 = vector.shape_cast %59 : vector<1x8x36xbf16> to vector<8x36xbf16>
    %cst_54 = arith.constant dense<0.000000e+00> : vector<8x144xf32>
    %61 = tpu.matmul %60, %1, %cst_54 {dimension_numbers = #tpu.dot_dimension_numbers<[1], [0], [0], [1], [0, 0, 1, 1], [], []>} : vector<8x36xbf16>, vector<36x144xbf16>, vector<8x144xf32> -> vector<8x144xf32>
    %62 = arith.truncf %61 : vector<8x144xf32> to vector<8x144xbf16>
    %c7_55 = arith.constant 7 : index
    %c0_56 = arith.constant 0 : index
    %c0_57 = arith.constant 0 : index
    %63 = vector.load %arg3[%c7_55, %c0_56, %c0_57] : memref<8x144x256xbf16, #tpu.memory_space<vmem>>, vector<1x144x256xbf16>
    %64 = vector.shape_cast %63 : vector<1x144x256xbf16> to vector<144x256xbf16>
    %cst_58 = arith.constant dense<0.000000e+00> : vector<8x256xf32>
    %65 = tpu.matmul %62, %64, %cst_58 {dimension_numbers = #tpu.dot_dimension_numbers<[1], [0], [0], [1], [0, 0, 1, 1], [], []>} : vector<8x144xbf16>, vector<144x256xbf16>, vector<8x256xf32> -> vector<8x256xf32>
    %66 = arith.addf %58, %65 : vector<8x256xf32>
    %c0_59 = arith.constant 0 : index
    %c0_60 = arith.constant 0 : index
    %67 = vector.load %arg4[%c0_59, %c0_60] : memref<1x256xf32, #tpu.memory_space<vmem>>, vector<1x256xf32>
    %68 = vector.broadcast %67 : vector<1x256xf32> to vector<8x256xf32>
    %69 = arith.addf %66, %68 : vector<8x256xf32>
    %cst_61 = arith.constant 0.000000e+00 : f32
    %70 = vector.broadcast %cst_61 : f32 to vector<8x256xf32>
    %71 = arith.cmpf ogt, %69, %70 : vector<8x256xf32>
    %cst_62 = arith.constant 0.000000e+00 : f32
    %72 = vector.broadcast %cst_62 : f32 to vector<8x256xf32>
    %73 = arith.minimumf %69, %72 : vector<8x256xf32>
    %74 = math.exp %73 : vector<8x256xf32>
    %cst_63 = arith.constant 1.000000e+00 : f32
    %75 = vector.broadcast %cst_63 : f32 to vector<8x256xf32>
    %76 = arith.subf %74, %75 : vector<8x256xf32>
    %77 = arith.select %71, %69, %76 : vector<8x256xi1>, vector<8x256xf32>
    %78 = arith.truncf %77 : vector<8x256xf32> to vector<8x256xbf16>
    %cst_64 = arith.constant 0.000000e+00 : f32
    %79 = vector.broadcast %cst_64 : f32 to vector<3x192xf32>
    %c0_65 = arith.constant 0 : index
    %c0_66 = arith.constant 0 : index
    %c0_67 = arith.constant 0 : index
    %80 = vector.load %arg5[%c0_65, %c0_66, %c0_67] : memref<4x3x8xbf16, #tpu.memory_space<vmem>>, vector<1x3x8xbf16>
    %81 = vector.shape_cast %80 : vector<1x3x8xbf16> to vector<3x8xbf16>
    %cst_68 = arith.constant dense<0.000000e+00> : vector<3x256xf32>
    %82 = tpu.matmul %81, %78, %cst_68 {dimension_numbers = #tpu.dot_dimension_numbers<[1], [0], [0], [1], [0, 0, 1, 1], [], []>} : vector<3x8xbf16>, vector<8x256xbf16>, vector<3x256xf32> -> vector<3x256xf32>
    %83 = arith.truncf %82 : vector<3x256xf32> to vector<3x256xbf16>
    %c0_69 = arith.constant 0 : index
    %c0_70 = arith.constant 0 : index
    %c0_71 = arith.constant 0 : index
    %84 = vector.load %arg6[%c0_69, %c0_70, %c0_71] : memref<4x256x192xbf16, #tpu.memory_space<vmem>>, vector<1x256x192xbf16>
    %85 = vector.shape_cast %84 : vector<1x256x192xbf16> to vector<256x192xbf16>
    %cst_72 = arith.constant dense<0.000000e+00> : vector<3x192xf32>
    %86 = tpu.matmul %83, %85, %cst_72 {dimension_numbers = #tpu.dot_dimension_numbers<[1], [0], [0], [1], [0, 0, 1, 1], [], []>} : vector<3x256xbf16>, vector<256x192xbf16>, vector<3x192xf32> -> vector<3x192xf32>
    %87 = arith.addf %79, %86 : vector<3x192xf32>
    %c1_73 = arith.constant 1 : index
    %c0_74 = arith.constant 0 : index
    %c0_75 = arith.constant 0 : index
    %88 = vector.load %arg5[%c1_73, %c0_74, %c0_75] : memref<4x3x8xbf16, #tpu.memory_space<vmem>>, vector<1x3x8xbf16>
    %89 = vector.shape_cast %88 : vector<1x3x8xbf16> to vector<3x8xbf16>
    %cst_76 = arith.constant dense<0.000000e+00> : vector<3x256xf32>
    %90 = tpu.matmul %89, %78, %cst_76 {dimension_numbers = #tpu.dot_dimension_numbers<[1], [0], [0], [1], [0, 0, 1, 1], [], []>} : vector<3x8xbf16>, vector<8x256xbf16>, vector<3x256xf32> -> vector<3x256xf32>
    %91 = arith.truncf %90 : vector<3x256xf32> to vector<3x256xbf16>
    %c1_77 = arith.constant 1 : index
    %c0_78 = arith.constant 0 : index
    %c0_79 = arith.constant 0 : index
    %92 = vector.load %arg6[%c1_77, %c0_78, %c0_79] : memref<4x256x192xbf16, #tpu.memory_space<vmem>>, vector<1x256x192xbf16>
    %93 = vector.shape_cast %92 : vector<1x256x192xbf16> to vector<256x192xbf16>
    %cst_80 = arith.constant dense<0.000000e+00> : vector<3x192xf32>
    %94 = tpu.matmul %91, %93, %cst_80 {dimension_numbers = #tpu.dot_dimension_numbers<[1], [0], [0], [1], [0, 0, 1, 1], [], []>} : vector<3x256xbf16>, vector<256x192xbf16>, vector<3x192xf32> -> vector<3x192xf32>
    %95 = arith.addf %87, %94 : vector<3x192xf32>
    %c2_81 = arith.constant 2 : index
    %c0_82 = arith.constant 0 : index
    %c0_83 = arith.constant 0 : index
    %96 = vector.load %arg5[%c2_81, %c0_82, %c0_83] : memref<4x3x8xbf16, #tpu.memory_space<vmem>>, vector<1x3x8xbf16>
    %97 = vector.shape_cast %96 : vector<1x3x8xbf16> to vector<3x8xbf16>
    %cst_84 = arith.constant dense<0.000000e+00> : vector<3x256xf32>
    %98 = tpu.matmul %97, %78, %cst_84 {dimension_numbers = #tpu.dot_dimension_numbers<[1], [0], [0], [1], [0, 0, 1, 1], [], []>} : vector<3x8xbf16>, vector<8x256xbf16>, vector<3x256xf32> -> vector<3x256xf32>
    %99 = arith.truncf %98 : vector<3x256xf32> to vector<3x256xbf16>
    %c2_85 = arith.constant 2 : index
    %c0_86 = arith.constant 0 : index
    %c0_87 = arith.constant 0 : index
    %100 = vector.load %arg6[%c2_85, %c0_86, %c0_87] : memref<4x256x192xbf16, #tpu.memory_space<vmem>>, vector<1x256x192xbf16>
    %101 = vector.shape_cast %100 : vector<1x256x192xbf16> to vector<256x192xbf16>
    %cst_88 = arith.constant dense<0.000000e+00> : vector<3x192xf32>
    %102 = tpu.matmul %99, %101, %cst_88 {dimension_numbers = #tpu.dot_dimension_numbers<[1], [0], [0], [1], [0, 0, 1, 1], [], []>} : vector<3x256xbf16>, vector<256x192xbf16>, vector<3x192xf32> -> vector<3x192xf32>
    %103 = arith.addf %95, %102 : vector<3x192xf32>
    %c3_89 = arith.constant 3 : index
    %c0_90 = arith.constant 0 : index
    %c0_91 = arith.constant 0 : index
    %104 = vector.load %arg5[%c3_89, %c0_90, %c0_91] : memref<4x3x8xbf16, #tpu.memory_space<vmem>>, vector<1x3x8xbf16>
    %105 = vector.shape_cast %104 : vector<1x3x8xbf16> to vector<3x8xbf16>
    %cst_92 = arith.constant dense<0.000000e+00> : vector<3x256xf32>
    %106 = tpu.matmul %105, %78, %cst_92 {dimension_numbers = #tpu.dot_dimension_numbers<[1], [0], [0], [1], [0, 0, 1, 1], [], []>} : vector<3x8xbf16>, vector<8x256xbf16>, vector<3x256xf32> -> vector<3x256xf32>
    %107 = arith.truncf %106 : vector<3x256xf32> to vector<3x256xbf16>
    %c3_93 = arith.constant 3 : index
    %c0_94 = arith.constant 0 : index
    %c0_95 = arith.constant 0 : index
    %108 = vector.load %arg6[%c3_93, %c0_94, %c0_95] : memref<4x256x192xbf16, #tpu.memory_space<vmem>>, vector<1x256x192xbf16>
    %109 = vector.shape_cast %108 : vector<1x256x192xbf16> to vector<256x192xbf16>
    %cst_96 = arith.constant dense<0.000000e+00> : vector<3x192xf32>
    %110 = tpu.matmul %107, %109, %cst_96 {dimension_numbers = #tpu.dot_dimension_numbers<[1], [0], [0], [1], [0, 0, 1, 1], [], []>} : vector<3x256xbf16>, vector<256x192xbf16>, vector<3x192xf32> -> vector<3x192xf32>
    %111 = arith.addf %103, %110 : vector<3x192xf32>
    %c0_97 = arith.constant 0 : index
    %c0_98 = arith.constant 0 : index
    %112 = vector.load %arg7[%c0_97, %c0_98] : memref<1x192xf32, #tpu.memory_space<vmem>>, vector<1x192xf32>
    %113 = vector.broadcast %112 : vector<1x192xf32> to vector<3x192xf32>
    %114 = arith.addf %111, %113 : vector<3x192xf32>
    %cst_99 = arith.constant 0.000000e+00 : f32
    %115 = vector.broadcast %cst_99 : f32 to vector<3x192xf32>
    %116 = arith.cmpf ogt, %114, %115 : vector<3x192xf32>
    %cst_100 = arith.constant 0.000000e+00 : f32
    %117 = vector.broadcast %cst_100 : f32 to vector<3x192xf32>
    %118 = arith.minimumf %114, %117 : vector<3x192xf32>
    %119 = math.exp %118 : vector<3x192xf32>
    %cst_101 = arith.constant 1.000000e+00 : f32
    %120 = vector.broadcast %cst_101 : f32 to vector<3x192xf32>
    %121 = arith.subf %119, %120 : vector<3x192xf32>
    %122 = arith.select %116, %114, %121 : vector<3x192xi1>, vector<3x192xf32>
    %123 = arith.truncf %122 : vector<3x192xf32> to vector<3x192xbf16>
    %cst_102 = arith.constant 0.000000e+00 : f32
    %124 = vector.broadcast %cst_102 : f32 to vector<1x64xf32>
    %c0_103 = arith.constant 0 : index
    %c0_104 = arith.constant 0 : index
    %c0_105 = arith.constant 0 : index
    %125 = vector.load %arg8[%c0_103, %c0_104, %c0_105] : memref<3x1x3xbf16, #tpu.memory_space<vmem>>, vector<1x1x3xbf16>
    %126 = vector.shape_cast %125 : vector<1x1x3xbf16> to vector<1x3xbf16>
    %cst_106 = arith.constant dense<0.000000e+00> : vector<1x192xf32>
    %127 = tpu.matmul %126, %123, %cst_106 {dimension_numbers = #tpu.dot_dimension_numbers<[1], [0], [0], [1], [0, 0, 1, 1], [], []>} : vector<1x3xbf16>, vector<3x192xbf16>, vector<1x192xf32> -> vector<1x192xf32>
    %128 = arith.truncf %127 : vector<1x192xf32> to vector<1x192xbf16>
    %c0_107 = arith.constant 0 : index
    %c0_108 = arith.constant 0 : index
    %c0_109 = arith.constant 0 : index
    %129 = vector.load %arg9[%c0_107, %c0_108, %c0_109] : memref<3x192x64xbf16, #tpu.memory_space<vmem>>, vector<1x192x64xbf16>
    %130 = vector.shape_cast %129 : vector<1x192x64xbf16> to vector<192x64xbf16>
    %cst_110 = arith.constant dense<0.000000e+00> : vector<1x64xf32>
    %131 = tpu.matmul %128, %130, %cst_110 {dimension_numbers = #tpu.dot_dimension_numbers<[1], [0], [0], [1], [0, 0, 1, 1], [], []>} : vector<1x192xbf16>, vector<192x64xbf16>, vector<1x64xf32> -> vector<1x64xf32>
    %132 = arith.addf %124, %131 : vector<1x64xf32>
    %c1_111 = arith.constant 1 : index
    %c0_112 = arith.constant 0 : index
    %c0_113 = arith.constant 0 : index
    %133 = vector.load %arg8[%c1_111, %c0_112, %c0_113] : memref<3x1x3xbf16, #tpu.memory_space<vmem>>, vector<1x1x3xbf16>
    %134 = vector.shape_cast %133 : vector<1x1x3xbf16> to vector<1x3xbf16>
    %cst_114 = arith.constant dense<0.000000e+00> : vector<1x192xf32>
    %135 = tpu.matmul %134, %123, %cst_114 {dimension_numbers = #tpu.dot_dimension_numbers<[1], [0], [0], [1], [0, 0, 1, 1], [], []>} : vector<1x3xbf16>, vector<3x192xbf16>, vector<1x192xf32> -> vector<1x192xf32>
    %136 = arith.truncf %135 : vector<1x192xf32> to vector<1x192xbf16>
    %c1_115 = arith.constant 1 : index
    %c0_116 = arith.constant 0 : index
    %c0_117 = arith.constant 0 : index
    %137 = vector.load %arg9[%c1_115, %c0_116, %c0_117] : memref<3x192x64xbf16, #tpu.memory_space<vmem>>, vector<1x192x64xbf16>
    %138 = vector.shape_cast %137 : vector<1x192x64xbf16> to vector<192x64xbf16>
    %cst_118 = arith.constant dense<0.000000e+00> : vector<1x64xf32>
    %139 = tpu.matmul %136, %138, %cst_118 {dimension_numbers = #tpu.dot_dimension_numbers<[1], [0], [0], [1], [0, 0, 1, 1], [], []>} : vector<1x192xbf16>, vector<192x64xbf16>, vector<1x64xf32> -> vector<1x64xf32>
    %140 = arith.addf %132, %139 : vector<1x64xf32>
    %c2_119 = arith.constant 2 : index
    %c0_120 = arith.constant 0 : index
    %c0_121 = arith.constant 0 : index
    %141 = vector.load %arg8[%c2_119, %c0_120, %c0_121] : memref<3x1x3xbf16, #tpu.memory_space<vmem>>, vector<1x1x3xbf16>
    %142 = vector.shape_cast %141 : vector<1x1x3xbf16> to vector<1x3xbf16>
    %cst_122 = arith.constant dense<0.000000e+00> : vector<1x192xf32>
    %143 = tpu.matmul %142, %123, %cst_122 {dimension_numbers = #tpu.dot_dimension_numbers<[1], [0], [0], [1], [0, 0, 1, 1], [], []>} : vector<1x3xbf16>, vector<3x192xbf16>, vector<1x192xf32> -> vector<1x192xf32>
    %144 = arith.truncf %143 : vector<1x192xf32> to vector<1x192xbf16>
    %c2_123 = arith.constant 2 : index
    %c0_124 = arith.constant 0 : index
    %c0_125 = arith.constant 0 : index
    %145 = vector.load %arg9[%c2_123, %c0_124, %c0_125] : memref<3x192x64xbf16, #tpu.memory_space<vmem>>, vector<1x192x64xbf16>
    %146 = vector.shape_cast %145 : vector<1x192x64xbf16> to vector<192x64xbf16>
    %cst_126 = arith.constant dense<0.000000e+00> : vector<1x64xf32>
    %147 = tpu.matmul %144, %146, %cst_126 {dimension_numbers = #tpu.dot_dimension_numbers<[1], [0], [0], [1], [0, 0, 1, 1], [], []>} : vector<1x192xbf16>, vector<192x64xbf16>, vector<1x64xf32> -> vector<1x64xf32>
    %148 = arith.addf %140, %147 : vector<1x64xf32>
    %c0_127 = arith.constant 0 : index
    %c0_128 = arith.constant 0 : index
    %149 = vector.load %arg10[%c0_127, %c0_128] : memref<1x64xf32, #tpu.memory_space<vmem>>, vector<1x64xf32>
    %150 = arith.addf %148, %149 : vector<1x64xf32>
    %cst_129 = arith.constant 0.000000e+00 : f32
    %151 = vector.broadcast %cst_129 : f32 to vector<1x64xf32>
    %152 = arith.cmpf ogt, %150, %151 : vector<1x64xf32>
    %cst_130 = arith.constant 0.000000e+00 : f32
    %153 = vector.broadcast %cst_130 : f32 to vector<1x64xf32>
    %154 = arith.minimumf %150, %153 : vector<1x64xf32>
    %155 = math.exp %154 : vector<1x64xf32>
    %cst_131 = arith.constant 1.000000e+00 : f32
    %156 = vector.broadcast %cst_131 : f32 to vector<1x64xf32>
    %157 = arith.subf %155, %156 : vector<1x64xf32>
    %158 = arith.select %152, %150, %157 : vector<1x64xi1>, vector<1x64xf32>
    %159 = arith.truncf %158 : vector<1x64xf32> to vector<1x64xbf16>
    %cst_132 = arith.constant 0.000000e+00 : f32
    %160 = vector.broadcast %cst_132 : f32 to vector<1x512xf32>
    %c0_133 = arith.constant 0 : index
    %c0_134 = arith.constant 0 : index
    %c0_135 = arith.constant 0 : index
    %161 = vector.load %arg11[%c0_133, %c0_134, %c0_135] : memref<1x64x512xbf16, #tpu.memory_space<vmem>>, vector<1x64x512xbf16>
    %162 = vector.shape_cast %161 : vector<1x64x512xbf16> to vector<64x512xbf16>
    %cst_136 = arith.constant dense<0.000000e+00> : vector<1x512xf32>
    %163 = tpu.matmul %159, %162, %cst_136 {dimension_numbers = #tpu.dot_dimension_numbers<[1], [0], [0], [1], [0, 0, 1, 1], [], []>} : vector<1x64xbf16>, vector<64x512xbf16>, vector<1x512xf32> -> vector<1x512xf32>
    %164 = arith.addf %160, %163 : vector<1x512xf32>
    %c0_137 = arith.constant 0 : index
    %c0_138 = arith.constant 0 : index
    %165 = vector.load %arg12[%c0_137, %c0_138] : memref<1x512xf32, #tpu.memory_space<vmem>>, vector<1x512xf32>
    %166 = arith.addf %164, %165 : vector<1x512xf32>
    %cst_139 = arith.constant 0.000000e+00 : f32
    %167 = vector.broadcast %cst_139 : f32 to vector<1x512xf32>
    %168 = arith.cmpf ogt, %166, %167 : vector<1x512xf32>
    %cst_140 = arith.constant 0.000000e+00 : f32
    %169 = vector.broadcast %cst_140 : f32 to vector<1x512xf32>
    %170 = arith.minimumf %166, %169 : vector<1x512xf32>
    %171 = math.exp %170 : vector<1x512xf32>
    %cst_141 = arith.constant 1.000000e+00 : f32
    %172 = vector.broadcast %cst_141 : f32 to vector<1x512xf32>
    %173 = arith.subf %171, %172 : vector<1x512xf32>
    %174 = arith.select %168, %166, %173 : vector<1x512xi1>, vector<1x512xf32>
    %175 = arith.truncf %174 : vector<1x512xf32> to vector<1x512xbf16>
    %c0_142 = arith.constant 0 : index
    %c0_143 = arith.constant 0 : index
    %176 = vector.load %arg13[%c0_142, %c0_143] : memref<512x128xbf16, #tpu.memory_space<vmem>>, vector<512x128xbf16>
    %cst_144 = arith.constant dense<0.000000e+00> : vector<1x128xf32>
    %177 = tpu.matmul %175, %176, %cst_144 {dimension_numbers = #tpu.dot_dimension_numbers<[1], [0], [0], [1], [0, 0, 1, 1], [], []>} : vector<1x512xbf16>, vector<512x128xbf16>, vector<1x128xf32> -> vector<1x128xf32>
    %c0_145 = arith.constant 0 : index
    %c0_146 = arith.constant 0 : index
    %178 = vector.load %arg14[%c0_145, %c0_146] : memref<1x128xf32, #tpu.memory_space<vmem>>, vector<1x128xf32>
    %179 = arith.addf %177, %178 : vector<1x128xf32>
    %c0_147 = arith.constant 0 : index
    %c0_148 = arith.constant 0 : index
    %c0_149 = arith.constant 0 : index
    %180 = vector.load %arg15[%c0_147, %c0_148, %c0_149] : memref<1x1x128xf32, #tpu.memory_space<vmem>>, vector<1x1x128xf32>
    %181 = vector.shape_cast %180 : vector<1x1x128xf32> to vector<1x128xf32>
    %182 = vector.shape_cast %179 : vector<1x128xf32> to vector<1x1x128xf32>
    tpu.vector_store %arg15[%c0_147, %c0_148, %c0_149], %182 {strides = array<i32>} : memref<1x1x128xf32, #tpu.memory_space<vmem>>, vector<1x1x128xf32>,
    return
  }
  func.func @transform_0(%arg0: i32) -> (i32, i32, i32) {
    %c0_i32 = arith.constant 0 : i32
    %c0_i32_0 = arith.constant 0 : i32
    %c0_i32_1 = arith.constant 0 : i32
    return %arg0, %c0_i32, %c0_i32_0 : i32, i32, i32
  }
  func.func @transform_1(%arg0: i32) -> (i32, i32, i32) {
    %c0_i32 = arith.constant 0 : i32
    %c0_i32_0 = arith.constant 0 : i32
    %c0_i32_1 = arith.constant 0 : i32
    %c0_i32_2 = arith.constant 0 : i32
    return %c0_i32, %c0_i32_0, %c0_i32_1 : i32, i32, i32
  }
  func.func @transform_2(%arg0: i32) -> (i32, i32, i32) {
    %c0_i32 = arith.constant 0 : i32
    %c0_i32_0 = arith.constant 0 : i32
    %c0_i32_1 = arith.constant 0 : i32
    %c0_i32_2 = arith.constant 0 : i32
    return %c0_i32, %c0_i32_0, %c0_i32_1 : i32, i32, i32
  }
  func.func @transform_3(%arg0: i32) -> (i32, i32) {
    %c0_i32 = arith.constant 0 : i32
    %c0_i32_0 = arith.constant 0 : i32
    %c0_i32_1 = arith.constant 0 : i32
    return %c0_i32, %c0_i32_0 : i32, i32
  }
  func.func @transform_4(%arg0: i32) -> (i32, i32, i32) {
    %c0_i32 = arith.constant 0 : i32
    %c0_i32_0 = arith.constant 0 : i32
    %c0_i32_1 = arith.constant 0 : i32
    %c0_i32_2 = arith.constant 0 : i32
    return %c0_i32, %c0_i32_0, %c0_i32_1 : i32, i32, i32
  }
  func.func @transform_5(%arg0: i32) -> (i32, i32, i32) {
    %c0_i32 = arith.constant 0 : i32
    %c0_i32_0 = arith.constant 0 : i32
    %c0_i32_1 = arith.constant 0 : i32
    %c0_i32_2 = arith.constant 0 : i32
    return %c0_i32, %c0_i32_0, %c0_i32_1 : i32, i32, i32
  }
  func.func @transform_6(%arg0: i32) -> (i32, i32) {
    %c0_i32 = arith.constant 0 : i32
    %c0_i32_0 = arith.constant 0 : i32
    %c0_i32_1 = arith.constant 0 : i32
    return %c0_i32, %c0_i32_0 : i32, i32
  }
  func.func @transform_7(%arg0: i32) -> (i32, i32, i32) {
    %c0_i32 = arith.constant 0 : i32
    %c0_i32_0 = arith.constant 0 : i32
    %c0_i32_1 = arith.constant 0 : i32
    %c0_i32_2 = arith.constant 0 : i32
    return %c0_i32, %c0_i32_0, %c0_i32_1 : i32, i32, i32
  }
  func.func @transform_8(%arg0: i32) -> (i32, i32, i32) {
    %c0_i32 = arith.constant 0 : i32
    %c0_i32_0 = arith.constant 0 : i32
    %c0_i32_1 = arith.constant 0 : i32
    %c0_i32_2 = arith.constant 0 : i32
    return %c0_i32, %c0_i32_0, %c0_i32_1 : i32, i32, i32
  }
  func.func @transform_9(%arg0: i32) -> (i32, i32) {
    %c0_i32 = arith.constant 0 : i32
    %c0_i32_0 = arith.constant 0 : i32
    %c0_i32_1 = arith.constant 0 : i32
    return %c0_i32, %c0_i32_0 : i32, i32
  }
  func.func @transform_10(%arg0: i32) -> (i32, i32, i32) {
    %c0_i32 = arith.constant 0 : i32
    %c0_i32_0 = arith.constant 0 : i32
    %c0_i32_1 = arith.constant 0 : i32
    %c0_i32_2 = arith.constant 0 : i32
    return %c0_i32, %c0_i32_0, %c0_i32_1 : i32, i32, i32
  }
  func.func @transform_11(%arg0: i32) -> (i32, i32) {
    %c0_i32 = arith.constant 0 : i32
    %c0_i32_0 = arith.constant 0 : i32
    %c0_i32_1 = arith.constant 0 : i32
    return %c0_i32, %c0_i32_0 : i32, i32
  }
  func.func @transform_12(%arg0: i32) -> (i32, i32) {
    %c0_i32 = arith.constant 0 : i32
    %c0_i32_0 = arith.constant 0 : i32
    %c0_i32_1 = arith.constant 0 : i32
    return %c0_i32, %c0_i32_0 : i32, i32
  }
  func.func @transform_13(%arg0: i32) -> (i32, i32) {
    %c0_i32 = arith.constant 0 : i32
    %c0_i32_0 = arith.constant 0 : i32
    %c0_i32_1 = arith.constant 0 : i32
    return %c0_i32, %c0_i32_0 : i32, i32
  }
  func.func @transform_14(%arg0: i32) -> (i32, i32, i32) {
    %c0_i32 = arith.constant 0 : i32
    %c0_i32_0 = arith.constant 0 : i32
    %c0_i32_1 = arith.constant 0 : i32
    return %arg0, %c0_i32, %c0_i32_0 : i32, i32, i32
  }
}

</mosaic_0001>

<bundles_post_ra>
// kernel: tpu_custom_call.1
= control target key start
LH: loop header
LB: loop body
LE: loop exit
PB: predicated region body
PF: predicated region fallthrough
CT: control target
= control target key end

     0   :  { %s7437_s0 = inlined_call_operand.vmem [shape: bf16[4,36,144], index: 0, kind: input, shape index: {}]   ;;  %s7438_s1 = inlined_call_operand.vmem [shape: bf16[8,8,36], index: 1, kind: input, shape index: {}]   ;;  %s7439_s2 = inlined_call_operand.vmem [shape: bf16[8,144,256], index: 2, kind: input, shape index: {}]   ;;  %s7440_s3 = inlined_call_operand.vmem [shape: f32[1,256], index: 3, kind: input, shape index: {}]   ;;  %s7441_s4 = inlined_call_operand.vmem [shape: bf16[4,3,8], index: 4, kind: input, shape index: {}]   ;;  %s7442_s5 = inlined_call_operand.vmem [shape: bf16[4,256,192], index: 5, kind: input, shape index: {}]   ;;  %s7443_s6 = inlined_call_operand.vmem [shape: f32[1,192], index: 6, kind: input, shape index: {}]   ;;  %s7444_s7 = inlined_call_operand.vmem [shape: bf16[3,1,3], index: 7, kind: input, shape index: {}]   ;;  %s7445_s8 = inlined_call_operand.vmem [shape: bf16[3,192,64], index: 8, kind: input, shape index: {}]   ;;  %s7446_s9 = inlined_call_operand.vmem [shape: f32[1,64], index: 9, kind: input, shape index: {}]   ;;  %s7447_s10 = inlined_call_operand.vmem [shape: bf16[1,64,512], index: 10, kind: input, shape index: {}]   ;;  %s7448_s11 = inlined_call_operand.vmem [shape: f32[1,512], index: 11, kind: input, shape index: {}]   ;;  %s7449_s12 = inlined_call_operand.vmem [shape: bf16[512,128], index: 12, kind: input, shape index: {}]   ;;  %s7450_s13 = inlined_call_operand.vmem [shape: f32[1,128], index: 13, kind: input, shape index: {}]   ;;  %s7451_s14 = inlined_call_operand.hbm [shape: f32[4,1,128], index: 14, kind: output, shape index: {}]  }
   0x1   :  { %7455 = sst [smem:[#allocation8_spill]] %s7437_s0 }
   0x2   :  { %19 = vsyncpa [#allocation3], 0 }
   0x3   :  { %21 = vsyncpa [#allocation3 + $0x1], 0  ;;  %s5996_s29 = smov 0   ;;  %s5998_s30 = smov 0  }
   0x4   :  { %s6000_s15 = smov 0   ;;  %s6002_s16 = smov 0  }
   0x5 LB: > { %7456 = sst [smem:[#allocation5_spill]] %s5912_s15  ;;  %s6017_s17 = sadd.s32 4294967295, %s5916_s16   ;;  %s5916_s16 = sphi %s6002_s16, %s7462_s16   ;;  %s5912_s15 = sphi %s6000_s15, %s7464_s15   ;;  %s5908_s30 = sphi %s5998_s30, %s7466_s30   ;;  %s5904_s29 = sphi %s5996_s29, %s7465_s29  }
   0x6   : > { %s4537_s18 = sadd.s32 4294967294, %s5916_s16   ;;  %s6021_s19 = sadd.s32 1, %s5916_s16  }
   0x7   : > { %7457 = sst [smem:[#allocation6_spill]] %s6021_s19  ;;  %s333_s20 = sadd.s32 1, %s5912_s15 }
   0x8   : > { %s330_s21 = ssub.s32 %s5916_s16, %s6021_s19  ;;  %p343_p0 = scmp.ne.s32.totalorder %s5912_s15, %s5908_s30 }
   0x9   : > { %p331_p1 = scmp.eq.s32.totalorder %s330_s21, 0  ;;  %p344_p2 = scmp.eq.s32.totalorder %s6017_s17, 3 }
   0xa   : > { %p349_p3 = scmp.ne.s32.totalorder %s5908_s30, %s5904_s29  ;;  %p350_p4 = scmp.eq.s32.totalorder %s4537_s18, 3 }
   0xb   : > { %s6032_s22 = scalar_select %p331_p1, %s5912_s15, %s333_s20  }
   0xc   : > { %p6034_p5 = por %p344_p2, %p343_p0  ;;  %p6038_p6 = por %p350_p4, %p349_p3 }
   0xd   : > { %7458 = sst [smem:[#allocation7_spill]] %s6032_s22  ;;  %p4540_p7 = scmp.ge.s32.totalorder %s5916_s16, 1 }
   0xe   : > { %p415_p8 = scmp.lt.s32.totalorder %s5916_s16, 5 }
  0x10   : > { %p416_p9 = pnand %p4540_p7, %p415_p8 }
  0x11   : > { %p460_p10 = scmp.lt.s32.totalorder (!%p416_p9), %s6017_s17, 3  ;;  %v5918_v0 = vmov (!%p416_p9), 0   ;;  %s7461_s0 = sld [smem:[#allocation8_spill]] (!%p416_p9)  ;;  %vm501_vm0 = vcmask (!%p416_p9), 1041408   ;;  %v5334_v8 = vld [vmem:[%s7439_s2 + $0x94] ss:$8 sps:$4 sm:$0xff] (!%p416_p9)  }
  0x12   : > { %419 = sbr.rel (%p416_p9) target bundleno = 3054 (0xbee), region = 76  ;;  %540 = vmatprep.mubr.bf16.mxu0 (!%p416_p9), %v5918_v0  ;;  %606 = vmatprep.mubr.bf16.mxu1 (!%p416_p9), %v5918_v0  ;;  %v5337_v10 = vld [vmem:[%s7439_s2 + $0x4] ss:$8 sps:$4 sm:$0xff] (!%p416_p9)   ;;  %v471_v11 = vld [vmem:[%s7438_s1] sm:$0xf] (!%p416_p9)  ;;  %vm497_vm1 = vcmask (!%p416_p9), 293888  }
  0x13   : > { %v4550_v12 = vld [vmem:[%s7438_s1 + $0x4] sm:$0xf] (!%p416_p9)  ;;  %v5332_v13 = vld [vmem:[%s7439_s2 + $0x90] ss:$8 sps:$4 sm:$0xff] (!%p416_p9)   ;;  %v5335_v14 = vld [vmem:[%s7439_s2] ss:$8 sps:$4 sm:$0xff] (!%p416_p9)  }
  0x14   : > { %v5340_v15 = vld [vmem:[%s7439_s2 + $0xa4] ss:$8 sps:$4 sm:$0xff] (!%p416_p9)   ;;  %v5343_v16 = vld [vmem:[%s7439_s2 + $0x14] ss:$8 sps:$4 sm:$0xff] (!%p416_p9)   ;;  %v5338_v17 = vld [vmem:[%s7439_s2 + $0xa0] ss:$8 sps:$4 sm:$0xff] (!%p416_p9)  }
  0x15   : > { %v5341_v18 = vld [vmem:[%s7439_s2 + $0x10] ss:$8 sps:$4 sm:$0xff] (!%p416_p9)   ;;  %v5346_v19 = vld [vmem:[%s7439_s2 + $0xb4] ss:$8 sps:$4 sm:$0xff] (!%p416_p9)   ;;  %v5349_v20 = vld [vmem:[%s7439_s2 + $0x24] ss:$8 sps:$4 sm:$0xff] (!%p416_p9)  }
  0x16   : > { %v5344_v21 = vld [vmem:[%s7439_s2 + $0xb0] ss:$8 sps:$4 sm:$0xff] (!%p416_p9)   ;;  %v5347_v22 = vld [vmem:[%s7439_s2 + $0x20] ss:$8 sps:$4 sm:$0xff] (!%p416_p9)   ;;  %v5352_v23 = vld [vmem:[%s7439_s2 + $0xc4] ss:$8 sps:$4 sm:$0xff] (!%p416_p9)  }
  0x17   : > { %v5355_v24 = vld [vmem:[%s7439_s2 + $0x34] ss:$8 sps:$4 sm:$0xff] (!%p416_p9)   ;;  %v5350_v25 = vld [vmem:[%s7439_s2 + $0xc0] ss:$8 sps:$4 sm:$0xff] (!%p416_p9)   ;;  %v5353_v26 = vld [vmem:[%s7439_s2 + $0x30] ss:$8 sps:$4 sm:$0xff] (!%p416_p9)  }
  0x18   : > { %v5358_v27 = vld [vmem:[%s7439_s2 + $0xd4] ss:$8 sps:$4 sm:$0xff] (!%p416_p9)   ;;  %v5361_v28 = vld [vmem:[%s7439_s2 + $0x44] ss:$8 sps:$4 sm:$0xff] (!%p416_p9)   ;;  %v5356_v29 = vld [vmem:[%s7439_s2 + $0xd0] ss:$8 sps:$4 sm:$0xff] (!%p416_p9)  }
  0x19   : > { %s461_s25 = scalar_select %p460_p10, %s6017_s17, 3  ;;  %v5359_v30 = vld [vmem:[%s7439_s2 + $0x40] ss:$8 sps:$4 sm:$0xff]   ;;  %v5364_v31 = vld [vmem:[%s7439_s2 + $0xe4] ss:$8 sps:$4 sm:$0xff]   ;;  %vm726_vm2 = vcmask 130048  }
  0x1a   : > { %v5367_v32 = vld [vmem:[%s7439_s2 + $0x54] ss:$8 sps:$4 sm:$0xff]   ;;  %v5362_v33 = vld [vmem:[%s7439_s2 + $0xe0] ss:$8 sps:$4 sm:$0xff]   ;;  %v5365_v34 = vld [vmem:[%s7439_s2 + $0x50] ss:$8 sps:$4 sm:$0xff]  }
  0x1b   : > { %s5282_s26 = smul.u32 40, %s461_s25  ;;  %v5370_v35 = vld [vmem:[%s7439_s2 + $0xf4] ss:$8 sps:$4 sm:$0xff]   ;;  %v5373_v36 = vld [vmem:[%s7439_s2 + $0x64] ss:$8 sps:$4 sm:$0xff]   ;;  %vm2156_vm5 = vcmask 1043456  }
  0x1c   : > { %v5368_v37 = vld [vmem:[%s7439_s2 + $0xf0] ss:$8 sps:$4 sm:$0xff]   ;;  %v5371_v38 = vld [vmem:[%s7439_s2 + $0x60] ss:$8 sps:$4 sm:$0xff]   ;;  %v5376_v39 = vld [vmem:[%s7439_s2 + $0x104] ss:$8 sps:$4 sm:$0xff]  }
  0x1d   : > { %s6051_s18 = scalar_lea.vmem %s7461_s0, %s5282_s26  ;;  %v5379_v40 = vld [vmem:[%s7439_s2 + $0x74] ss:$8 sps:$4 sm:$0xff]   ;;  %v5374_v41 = vld [vmem:[%s7439_s2 + $0x100] ss:$8 sps:$4 sm:$0xff]   ;;  %v5377_v42 = vld [vmem:[%s7439_s2 + $0x70] ss:$8 sps:$4 sm:$0xff]  }
  0x1e   : > { %v6054_v1 = vld [vmem:[%s6051_s18 + $0x4] ss:$8 sps:$4 sm:$0xff]   ;;  %v5326_v2 = vld [vmem:[%s6051_s18] ss:$8 sps:$4 sm:$0xff]   ;;  %v5327_v3 = vld [vmem:[%s6051_s18 + $0x14] ss:$8 sps:$4 sm:$0xff]  }
  0x1f   : > { %508 = vmatprep.subr.bf16.mxu0 %v6054_v1  ;;  %574 = vmatprep.subr.bf16.mxu1 %v6054_v1  ;;  %v470_v4 = vld [vmem:[%s6051_s18 + $0x20] sm:$0x33]  ;;  %v5329_v5 = vld [vmem:[%s6051_s18 + $0x10] ss:$8 sps:$4 sm:$0xff]   ;;  %v5382_v43 = vld [vmem:[%s7439_s2 + $0x114] ss:$8 sps:$4 sm:$0xff]  }
  0x20   : > { %509 = vmatpush1.bf16.msra.mxu0 %v5326_v2  ;;  %575 = vmatpush1.bf16.msra.mxu1 %v5326_v2  ;;  %v6062_v6 = vcombine.high %v470_v4, %v470_v4  ;;  %v4546_v7 = vcombine.low %v470_v4, %v470_v4  ;;  %v5380_v44 = vld [vmem:[%s7439_s2 + $0x110] ss:$8 sps:$4 sm:$0xff]   ;;  %v5385_v45 = vld [vmem:[%s7439_s2 + $0x84] ss:$8 sps:$4 sm:$0xff]   ;;  %v5383_v46 = vld [vmem:[%s7439_s2 + $0x80] ss:$8 sps:$4 sm:$0xff]  }
  0x21   : > { %510 = vmatprep.subr.bf16.mxu0 %v5327_v3  ;;  %576 = vmatprep.subr.bf16.mxu1 %v5327_v3  ;;  %v5388_v47 = vld [vmem:[%s7439_s2 + $0x124] ss:$8 sps:$4 sm:$0xff]   ;;  %v5386_v60 = vld [vmem:[%s7439_s2 + $0x120] ss:$8 sps:$4 sm:$0xff]   ;;  %v5391_v61 = vld [vmem:[%s7439_s2 + $0x134] ss:$8 sps:$4 sm:$0xff]  }
  0x22   : > { %v6072_v9 = vsel %vm501_vm0, %v4546_v7, 0  ;;  %v6202_v62 = vld [vmem:[%s6051_s18] ss:$8 sps:$4 sm:$0xff]   ;;  %v6207_v63 = vld [vmem:[%s6051_s18 + $0x14] ss:$8 sps:$4 sm:$0xff]   ;;  %vm2152_vm6 = vcmask 64512  }
  0x23   : > { %v5394_v2 = vld [vmem:[%s7439_s2 + $0x144] ss:$8 sps:$4 sm:$0xff]   ;;  %v6217_v3 = vld [vmem:[%s6051_s18 + $0x10] ss:$8 sps:$4 sm:$0xff]   ;;  %v5392_v4 = vld [vmem:[%s7439_s2 + $0x140] ss:$8 sps:$4 sm:$0xff]  }
  0x24   : > { %511 = vmatpush1.bf16.msra.mxu0 %v5329_v5  ;;  %577 = vmatpush1.bf16.msra.mxu1 %v5329_v5  ;;  %v5397_v5 = vld [vmem:[%s7439_s2 + $0x154] ss:$8 sps:$4 sm:$0xff]   ;;  %v4609_v7 = vld [vmem:[%s7438_s1 + $0x8] sm:$0xf]  ;;  %vm3322_vm7 = vcmask 1040384   ;;  %vm3318_vm10 = vcmask 23552  }
  0x25   : > { %4548 = vmatprep.subr.msk.bf16.mxu0 %vm501_vm0, %v6062_v6  ;;  %4551 = vmatprep.subr.msk.bf16.mxu1 %vm501_vm0, %v6062_v6  ;;  %vm3543_vm11 = vcmask 523264   ;;  %s458_s25 = sand.u32 1, %s5908_s30   ;;  %s5235_s0 = sshll.u32 %s6017_s17, 4 }
  0x26   : > { %s459_s19 = scalar_lea.vmem [#allocation2], %s458_s25  ;;  %s7395_s20 = scalar_lea.hbm %s7451_s14, %s5235_s0 }
  0x27   : > { %s4482_s28 = sshll.u32 %s459_s19, 4  ;;  %s4470_s15 = scalar_lea.sflag [#allocation3], %s458_s25  ;;  %s7397_s28 = int_to_ptr.vmem [resolvable:$true] %s4482_s28 }
  0x28   : > { %513 = vmatpush1.bf16.msra.mxu0 %v6072_v9  ;;  %579 = vmatpush1.bf16.msra.mxu1 %v6072_v9  ;;  %s5854_s17 = scalar_lea.vmem %s7397_s28, 16  ;;  %s5920_s21 = smov [#allocation2]  }
  0x29   : > { %730 = vmatprep.subr.bf16.mxu0 %v5334_v8  ;;  %864 = vmatprep.subr.bf16.mxu1 %v5337_v10  ;;  %v6233_v8 = vld [vmem:[%s6051_s18 + $0x4] ss:$8 sps:$4 sm:$0xff]   ;;  %v5395_v10 = vld [vmem:[%s7439_s2 + $0x150] ss:$8 sps:$4 sm:$0xff]   ;;  %p5855_p11 = scmp.ne.s32.totalorder %s7397_s28, %s5854_s17  ;;  %s5858_s26 = sshll.u32 %s5920_s21, 4  ;;  %s5859_s26 = int_to_ptr.vmem [resolvable:$false] %s5858_s26 }
  0x2a   : > { %s5860_s27 = scalar_lea.vmem %s5859_s26, 32  ;;  %p5861_p0 = scmp.lt.s32.totalorder %s7397_s28, %s5859_s26 }
  0x2b   : > { %4549 = vmatmul.mubr.msk.bf16.vlgmr.msra.gmra.mrb[0].mxu0 %vm497_vm1, %v471_v11  ;;  %4552 = vmatmul.mubr.msk.bf16.vlgmr.msra.gmra.mrb[0].mxu1 %vm497_vm1, %v4550_v12  ;;  %v5403_v11 = vld [vmem:[%s7439_s2 + $0x164] ss:$8 sps:$4 sm:$0xff]   ;;  %v5401_v12 = vld [vmem:[%s7439_s2 + $0x160] ss:$8 sps:$4 sm:$0xff]   ;;  %p5856_p12 = pnand %p5855_p11, %p6034_p5  ;;  %p5862_p1 = scmp.lt.s32.totalorder %s5860_s27, %s5854_s17 }
  0x2c   : > { %731 = vmatpush1.bf16.msra.mxu0 %v5332_v13  ;;  %865 = vmatpush1.bf16.msra.mxu1 %v5335_v14  ;;  %v5409_v13 = vld [vmem:[%s7439_s2 + $0x174] ss:$8 sps:$4 sm:$0xff]  }
  0x2d   : > { %732 = vmatprep.subr.bf16.mxu0 %v5340_v15  ;;  %866 = vmatprep.subr.bf16.mxu1 %v5343_v16  ;;  %v5400_v14 = vld [vmem:[%s7439_s2 + $0x1b4] ss:$8 sps:$4 sm:$0xff]   ;;  %v5407_v15 = vld [vmem:[%s7439_s2 + $0x170] ss:$8 sps:$4 sm:$0xff]   ;;  %v4649_v16 = vld [vmem:[%s7438_s1 + $0xc] sm:$0xf]  ;;  %p5857_p13 = pneg %p5856_p12  ;;  %p5863_p2 = por %p5862_p1, %p5861_p0 }
  0x2f   : > { %p5864_p3 = pnand %p5863_p2, %p5857_p13 }
  0x30   : > { %733 = vmatpush1.bf16.msra.mxu0 %v5338_v17  ;;  %867 = vmatpush1.bf16.msra.mxu1 %v5341_v18  ;;  %v5398_v17 = vld [vmem:[%s7439_s2 + $0x1b0] ss:$8 sps:$4 sm:$0xff]   ;;  %v5406_v18 = vld [vmem:[%s7439_s2 + $0x1c4] ss:$8 sps:$4 sm:$0xff]  }
  0x31   : > { %734 = vmatprep.subr.bf16.mxu0 %v5346_v19  ;;  %868 = vmatprep.subr.bf16.mxu1 %v5349_v20  ;;  %v5404_v19 = vld [vmem:[%s7439_s2 + $0x1c0] ss:$8 sps:$4 sm:$0xff]   ;;  %v5412_v20 = vld [vmem:[%s7439_s2 + $0x1d4] ss:$8 sps:$4 sm:$0xff]  }
  0x34   : > { %735 = vmatpush1.bf16.msra.mxu0 %v5344_v21  ;;  %869 = vmatpush1.bf16.msra.mxu1 %v5347_v22  ;;  %v5410_v21 = vld [vmem:[%s7439_s2 + $0x1d0] ss:$8 sps:$4 sm:$0xff]   ;;  %v5415_v22 = vld [vmem:[%s7439_s2 + $0x184] ss:$8 sps:$4 sm:$0xff]  }
  0x35   : > { %736 = vmatprep.subr.bf16.mxu0 %v5352_v23  ;;  %870 = vmatprep.subr.bf16.mxu1 %v5355_v24  ;;  %v5418_v23 = vld [vmem:[%s7439_s2 + $0x1e4] ss:$8 sps:$4 sm:$0xff]   ;;  %v5413_v24 = vld [vmem:[%s7439_s2 + $0x180] ss:$8 sps:$4 sm:$0xff]  }
  0x38   : > { %737 = vmatpush1.bf16.msra.mxu0 %v5350_v25  ;;  %871 = vmatpush1.bf16.msra.mxu1 %v5353_v26  ;;  %v5416_v25 = vld [vmem:[%s7439_s2 + $0x1e0] ss:$8 sps:$4 sm:$0xff]   ;;  %v5421_v26 = vld [vmem:[%s7439_s2 + $0x194] ss:$8 sps:$4 sm:$0xff]  }
  0x39   : > { %738 = vmatprep.subr.bf16.mxu0 %v5358_v27  ;;  %872 = vmatprep.subr.bf16.mxu1 %v5361_v28  ;;  %v5424_v27 = vld [vmem:[%s7439_s2 + $0x1f4] ss:$8 sps:$4 sm:$0xff]   ;;  %v5419_v28 = vld [vmem:[%s7439_s2 + $0x190] ss:$8 sps:$4 sm:$0xff]  }
  0x3c   : > { %739 = vmatpush1.bf16.msra.mxu0 %v5356_v29  ;;  %873 = vmatpush1.bf16.msra.mxu1 %v5359_v30  ;;  %v5422_v29 = vld [vmem:[%s7439_s2 + $0x1f0] ss:$8 sps:$4 sm:$0xff]   ;;  %v5427_v30 = vld [vmem:[%s7439_s2 + $0x1a4] ss:$8 sps:$4 sm:$0xff]  }
  0x3d   : > { %740 = vmatprep.subr.bf16.mxu0 %v5364_v31  ;;  %874 = vmatprep.subr.bf16.mxu1 %v5367_v32  ;;  %v5430_v31 = vld [vmem:[%s7439_s2 + $0x204] ss:$8 sps:$4 sm:$0xff]   ;;  %v5425_v32 = vld [vmem:[%s7439_s2 + $0x1a0] ss:$8 sps:$4 sm:$0xff]  }
  0x40   : > { %741 = vmatpush1.bf16.msra.mxu0 %v5362_v33  ;;  %875 = vmatpush1.bf16.msra.mxu1 %v5365_v34  ;;  %v5428_v33 = vld [vmem:[%s7439_s2 + $0x200] ss:$8 sps:$4 sm:$0xff]   ;;  %v5433_v34 = vld [vmem:[%s7439_s2 + $0x214] ss:$8 sps:$4 sm:$0xff]  }
  0x41   : > { %742 = vmatprep.subr.bf16.mxu0 %v5370_v35  ;;  %876 = vmatprep.subr.bf16.mxu1 %v5373_v36  ;;  %v5431_v35 = vld [vmem:[%s7439_s2 + $0x210] ss:$8 sps:$4 sm:$0xff]   ;;  %v5434_v36 = vld [vmem:[%s7439_s2 + $0x220] ss:$8 sps:$4 sm:$0xff]  }
  0x44   : > { %743 = vmatpush1.bf16.msra.mxu0 %v5368_v37  ;;  %877 = vmatpush1.bf16.msra.mxu1 %v5371_v38  ;;  %v5436_v37 = vld [vmem:[%s7439_s2 + $0x224] ss:$8 sps:$4 sm:$0xff]   ;;  %v5439_v38 = vld [vmem:[%s7439_s2 + $0x234] ss:$8 sps:$4 sm:$0xff]  }
  0x45   : > { %744 = vmatprep.subr.bf16.mxu0 %v5376_v39  ;;  %878 = vmatprep.subr.bf16.mxu1 %v5379_v40  ;;  %v5437_v39 = vld [vmem:[%s7439_s2 + $0x230] ss:$8 sps:$4 sm:$0xff]  }
  0x48   : > { %745 = vmatpush1.bf16.msra.mxu0 %v5374_v41  ;;  %879 = vmatpush1.bf16.msra.mxu1 %v5377_v42 }
  0x49   : > { %746 = vmatprep.subr.bf16.mxu0 %v5382_v43  ;;  %880 = vmatprep.subr.bf16.mxu1 %v5385_v45 }
  0x4c   : > { %747 = vmatpush1.bf16.msra.mxu0 %v5380_v44  ;;  %881 = vmatpush1.bf16.msra.mxu1 %v5383_v46 }
  0x4d   : > { %910 = vmatprep.subr.bf16.mxu0 %v6054_v1  ;;  %1065 = vmatprep.subr.bf16.mxu1 %v5388_v47  ;;  %v5389_v1 = vld [vmem:[%s7439_s2 + $0x130] ss:$8 sps:$4 sm:$0xff]  }
  0xfe   : > { %v542_v48 = vpop.f32.mrb[0].mxu0  ;;  %v608_v49 = vpop.f32.mrb[0].mxu1 }
  0xff   : > { %v549_v50 = vpack.c.bf16 %v542_v48, %v542_v48  ;;  %v544_v51 = vpop.f32.mrb[1].mxu0  ;;  %v610_v52 = vpop.f32.mrb[1].mxu1  ;;  %v615_v57 = vpack.c.bf16 %v608_v49, %v608_v49 }
 0x100   : > { %v550_v53 = vpack.c.bf16 %v544_v51, %v544_v51  ;;  %v616_v54 = vpack.c.bf16 %v610_v52, %v610_v52  ;;  %v612_v55 = vpop.f32.mrb[2].mxu1  ;;  %v546_v56 = vpop.f32.mrb[2].mxu0 }
 0x101   : > { %v613_v58 = vpop.f32.mrb[3].mxu1  ;;  %v547_v59 = vpop.f32.mrb[3].mxu0  ;;  %v5442_v56 = vld [vmem:[%s7439_s2 + $0x244] ss:$8 sps:$4 sm:$0xff]  }
 0x102   : > { %4589 = vmatprep.mubr.msk.bf16.mxu0 %vm726_vm2, %v616_v54  ;;  %4608 = vmatprep.mubr.msk.bf16.mxu1 %vm726_vm2, %v550_v53 }
 0x103   : > { %763 = vmatmul.mubr.bf16.vlgmr.msra.gmra.mrb[4].mxu0 %v615_v57  ;;  %897 = vmatmul.mubr.bf16.vlgmr.msra.gmra.mrb[4].mxu1 %v549_v50 }
 0x104   : > { %911 = vmatpush1.bf16.msra.mxu0 %v6202_v62  ;;  %942 = vmatprep.mubr.bf16.mxu0 %v5918_v0 }
 0x105   : > { %912 = vmatprep.subr.bf16.mxu0 %v6207_v63  ;;  %1066 = vmatpush1.bf16.msra.mxu1 %v5386_v60 }
 0x106   : > { %1067 = vmatprep.subr.bf16.mxu1 %v5391_v61  ;;  %v4689_v61 = vld [vmem:[%s7438_s1 + $0x10] sm:$0xf] }
 0x108   : > { %913 = vmatpush1.bf16.msra.mxu0 %v6217_v3 }
 0x109   : > { %4610 = vmatprep.subr.msk.bf16.mxu0 %vm501_vm0, %v6062_v6  ;;  %1068 = vmatpush1.bf16.msra.mxu1 %v5389_v1 }
 0x10a   : > { %1069 = vmatprep.subr.bf16.mxu1 %v5394_v2 }
 0x10c   : > { %915 = vmatpush1.bf16.msra.mxu0 %v6072_v9 }
 0x10d   : > { %1113 = vmatprep.subr.bf16.mxu0 %v6233_v8  ;;  %1070 = vmatpush1.bf16.msra.mxu1 %v5392_v4  ;;  %v5440_v4 = vld [vmem:[%s7439_s2 + $0x240] ss:$8 sps:$4 sm:$0xff]  }
 0x10e   : > { %1071 = vmatprep.subr.bf16.mxu1 %v5397_v5  ;;  %v5445_v5 = vld [vmem:[%s7439_s2 + $0x254] ss:$8 sps:$4 sm:$0xff]  }
 0x10f   : > { %4611 = vmatmul.mubr.msk.bf16.vlgmr.msra.gmra.mrb[8].mxu0 %vm497_vm1, %v4609_v7  ;;  %v5443_v7 = vld [vmem:[%s7439_s2 + $0x250] ss:$8 sps:$4 sm:$0xff]  }
 0x110   : > { %1114 = vmatpush1.bf16.msra.mxu0 %v6202_v62  ;;  %1145 = vmatprep.mubr.bf16.mxu0 %v5918_v0 }
 0x111   : > { %1115 = vmatprep.subr.bf16.mxu0 %v6207_v63  ;;  %1072 = vmatpush1.bf16.msra.mxu1 %v5395_v10  ;;  %v5448_v10 = vld [vmem:[%s7439_s2 + $0x264] ss:$8 sps:$4 sm:$0xff]  }
 0x112   : > { %1073 = vmatprep.subr.bf16.mxu1 %v5403_v11  ;;  %v5446_v11 = vld [vmem:[%s7439_s2 + $0x260] ss:$8 sps:$4 sm:$0xff]  }
 0x114   : > { %1116 = vmatpush1.bf16.msra.mxu0 %v6217_v3 }
 0x115   : > { %4650 = vmatprep.subr.msk.bf16.mxu0 %vm501_vm0, %v6062_v6  ;;  %1074 = vmatpush1.bf16.msra.mxu1 %v5401_v12  ;;  %v5454_v12 = vld [vmem:[%s7439_s2 + $0x2d4] ss:$8 sps:$4 sm:$0xff]  }
 0x116   : > { %1075 = vmatprep.subr.bf16.mxu1 %v5409_v13  ;;  %v5451_v13 = vld [vmem:[%s7439_s2 + $0x274] ss:$8 sps:$4 sm:$0xff]  }
 0x118   : > { %1118 = vmatpush1.bf16.msra.mxu0 %v6072_v9 }
 0x119   : > { %1268 = vmatprep.subr.bf16.mxu0 %v5400_v14  ;;  %1076 = vmatpush1.bf16.msra.mxu1 %v5407_v15  ;;  %v4729_v14 = vld [vmem:[%s7438_s1 + $0x14] sm:$0xf]  ;;  %v5452_v15 = vld [vmem:[%s7439_s2 + $0x2d0] ss:$8 sps:$4 sm:$0xff]  }
 0x11a   : > { %1077 = vmatprep.subr.bf16.mxu1 %v5415_v22  ;;  %v5463_v22 = vld [vmem:[%s7439_s2 + $0x294] ss:$8 sps:$4 sm:$0xff]  }
 0x11b   : > { %4651 = vmatmul.mubr.msk.bf16.vlgmr.msra.gmra.mrb[12].mxu0 %vm497_vm1, %v4649_v16  ;;  %v5449_v16 = vld [vmem:[%s7439_s2 + $0x270] ss:$8 sps:$4 sm:$0xff]  }
 0x11c   : > { %1269 = vmatpush1.bf16.msra.mxu0 %v5398_v17  ;;  %v5460_v17 = vld [vmem:[%s7439_s2 + $0x2e4] ss:$8 sps:$4 sm:$0xff]  }
 0x11d   : > { %1270 = vmatprep.subr.bf16.mxu0 %v5406_v18  ;;  %1078 = vmatpush1.bf16.msra.mxu1 %v5413_v24  ;;  %v5457_v18 = vld [vmem:[%s7439_s2 + $0x284] ss:$8 sps:$4 sm:$0xff]   ;;  %v5461_v24 = vld [vmem:[%s7439_s2 + $0x290] ss:$8 sps:$4 sm:$0xff]  }
 0x11e   : > { %1079 = vmatprep.subr.bf16.mxu1 %v5421_v26  ;;  %v5472_v26 = vld [vmem:[%s7439_s2 + $0x304] ss:$8 sps:$4 sm:$0xff]  }
 0x120   : > { %1271 = vmatpush1.bf16.msra.mxu0 %v5404_v19  ;;  %v5458_v19 = vld [vmem:[%s7439_s2 + $0x2e0] ss:$8 sps:$4 sm:$0xff]  }
 0x121   : > { %1272 = vmatprep.subr.bf16.mxu0 %v5412_v20  ;;  %1080 = vmatpush1.bf16.msra.mxu1 %v5419_v28  ;;  %v5455_v20 = vld [vmem:[%s7439_s2 + $0x280] ss:$8 sps:$4 sm:$0xff]  }
 0x122   : > { %1081 = vmatprep.subr.bf16.mxu1 %v5427_v30  ;;  %v5470_v28 = vld [vmem:[%s7439_s2 + $0x300] ss:$8 sps:$4 sm:$0xff]   ;;  %v5478_v30 = vld [vmem:[%s7439_s2 + $0x314] ss:$8 sps:$4 sm:$0xff]  }
 0x124   : > { %1273 = vmatpush1.bf16.msra.mxu0 %v5410_v21  ;;  %v5466_v21 = vld [vmem:[%s7439_s2 + $0x2f4] ss:$8 sps:$4 sm:$0xff]  }
 0x125   : > { %1274 = vmatprep.subr.bf16.mxu0 %v5418_v23  ;;  %1082 = vmatpush1.bf16.msra.mxu1 %v5425_v32  ;;  %v5464_v23 = vld [vmem:[%s7439_s2 + $0x2f0] ss:$8 sps:$4 sm:$0xff]  }
 0x126   : > { %1316 = vmatprep.subr.bf16.mxu1 %v6233_v8  ;;  %v5476_v32 = vld [vmem:[%s7439_s2 + $0x310] ss:$8 sps:$4 sm:$0xff]  }
 0x128   : > { %1275 = vmatpush1.bf16.msra.mxu0 %v5416_v25  ;;  %v5469_v25 = vld [vmem:[%s7439_s2 + $0x2a4] ss:$8 sps:$4 sm:$0xff]  }
 0x129   : > { %1276 = vmatprep.subr.bf16.mxu0 %v5424_v27  ;;  %v5467_v27 = vld [vmem:[%s7439_s2 + $0x2a0] ss:$8 sps:$4 sm:$0xff]  }
 0x12c   : > { %1277 = vmatpush1.bf16.msra.mxu0 %v5422_v29  ;;  %v5475_v29 = vld [vmem:[%s7439_s2 + $0x2b4] ss:$8 sps:$4 sm:$0xff]  }
 0x12d   : > { %1278 = vmatprep.subr.bf16.mxu0 %v5430_v31  ;;  %v5473_v31 = vld [vmem:[%s7439_s2 + $0x2b0] ss:$8 sps:$4 sm:$0xff]  }
 0x130   : > { %1279 = vmatpush1.bf16.msra.mxu0 %v5428_v33  ;;  %v5481_v33 = vld [vmem:[%s7439_s2 + $0x2c4] ss:$8 sps:$4 sm:$0xff]  }
 0x131   : > { %1280 = vmatprep.subr.bf16.mxu0 %v5433_v34  ;;  %v5484_v34 = vld [vmem:[%s7439_s2 + $0x324] ss:$8 sps:$4 sm:$0xff]  }
 0x134   : > { %1281 = vmatpush1.bf16.msra.mxu0 %v5431_v35  ;;  %v5479_v35 = vld [vmem:[%s7439_s2 + $0x2c0] ss:$8 sps:$4 sm:$0xff]  }
 0x135   : > { %1282 = vmatprep.subr.bf16.mxu0 %v5436_v37  ;;  %v5487_v37 = vld [vmem:[%s7439_s2 + $0x334] ss:$8 sps:$4 sm:$0xff]  }
 0x138   : > { %1283 = vmatpush1.bf16.msra.mxu0 %v5434_v36  ;;  %v5482_v36 = vld [vmem:[%s7439_s2 + $0x320] ss:$8 sps:$4 sm:$0xff]  }
 0x139   : > { %1284 = vmatprep.subr.bf16.mxu0 %v5439_v38  ;;  %v5485_v38 = vld [vmem:[%s7439_s2 + $0x330] ss:$8 sps:$4 sm:$0xff]  }
 0x13c   : > { %1285 = vmatpush1.bf16.msra.mxu0 %v5437_v39  ;;  %v5488_v39 = vld [vmem:[%s7439_s2 + $0x340] ss:$8 sps:$4 sm:$0xff]  }
 0x13d   : > { %1519 = vmatprep.subr.bf16.mxu0 %v6233_v8 }
 0x1d6   : > { %v764_v40 = vpop.f32.mrb[4].mxu0  ;;  %v898_v41 = vpop.f32.mrb[4].mxu1 }
 0x1d7   : > { %v6337_v42 = vadd.f32 %v898_v41, %v764_v40  ;;  %v766_v43 = vpop.f32.mrb[5].mxu0  ;;  %v900_v44 = vpop.f32.mrb[5].mxu1  ;;  %v5490_v40 = vld [vmem:[%s7439_s2 + $0x344] ss:$8 sps:$4 sm:$0xff]   ;;  %v5493_v41 = vld [vmem:[%s7439_s2 + $0x354] ss:$8 sps:$4 sm:$0xff]  }
 0x1d8   : > { %v6339_v45 = vadd.f32 %v900_v44, %v766_v43  ;;  %v768_v46 = vpop.f32.mrb[6].mxu0  ;;  %v902_v47 = vpop.f32.mrb[6].mxu1  ;;  %v5491_v43 = vld [vmem:[%s7439_s2 + $0x350] ss:$8 sps:$4 sm:$0xff]  }
 0x1d9   : > { %v769_v48 = vpop.f32.mrb[7].mxu0  ;;  %v903_v49 = vpop.f32.mrb[7].mxu1 }
 0x1e2   : > { %v944_v50 = vpop.f32.mrb[8].mxu0 }
 0x1e3   : > { %v951_v51 = vpack.c.bf16 %v944_v50, %v944_v50  ;;  %v946_v52 = vpop.f32.mrb[9].mxu0 }
 0x1e4   : > { %v952_v53 = vpack.c.bf16 %v946_v52, %v946_v52  ;;  %v948_v54 = vpop.f32.mrb[10].mxu0 }
 0x1e5   : > { %v949_v55 = vpop.f32.mrb[11].mxu0 }
 0x1e6   : > { %4648 = vmatprep.mubr.msk.bf16.mxu1 %vm726_vm2, %v952_v53 }
 0x1e7   : > { %1098 = vmatmul.mubr.bf16.vlgmr.msra.gmra.mrb[8].mxu1 %v951_v51 }
 0x1e8   : > { %1317 = vmatpush1.bf16.msra.mxu1 %v6202_v62  ;;  %1348 = vmatprep.mubr.bf16.mxu1 %v5918_v0 }
 0x1e9   : > { %1318 = vmatprep.subr.bf16.mxu1 %v6207_v63 }
 0x1ec   : > { %1319 = vmatpush1.bf16.msra.mxu1 %v6217_v3 }
 0x1ed   : > { %4690 = vmatprep.subr.msk.bf16.mxu1 %vm501_vm0, %v6062_v6 }
 0x1ee   : > { %v1147_v57 = vpop.f32.mrb[12].mxu0 }
 0x1ef   : > { %v1149_v58 = vpop.f32.mrb[13].mxu0  ;;  %v1154_v1 = vpack.c.bf16 %v1147_v57, %v1147_v57 }
 0x1f0   : > { %v1155_v59 = vpack.c.bf16 %v1149_v58, %v1149_v58  ;;  %1321 = vmatpush1.bf16.msra.mxu1 %v6072_v9  ;;  %v1151_v60 = vpop.f32.mrb[14].mxu0 }
 0x1f1   : > { %v1152_v2 = vpop.f32.mrb[15].mxu0  ;;  %1471 = vmatprep.subr.bf16.mxu1 %v5442_v56 }
 0x1f2   : > { %4688 = vmatprep.mubr.msk.bf16.mxu0 %vm726_vm2, %v1155_v59 }
 0x1f3   : > { %4691 = vmatmul.mubr.msk.bf16.vlgmr.msra.gmra.mrb[12].mxu1 %vm497_vm1, %v4689_v61  ;;  %1301 = vmatmul.mubr.bf16.vlgmr.msra.gmra.mrb[16].mxu0 %v1154_v1 }
 0x1f4   : > { %1520 = vmatpush1.bf16.msra.mxu0 %v6202_v62  ;;  %1551 = vmatprep.mubr.bf16.mxu0 %v5918_v0 }
 0x1f5   : > { %1521 = vmatprep.subr.bf16.mxu0 %v6207_v63  ;;  %1472 = vmatpush1.bf16.msra.mxu1 %v5440_v4 }
 0x1f6   : > { %1473 = vmatprep.subr.bf16.mxu1 %v5445_v5  ;;  %v4769_v5 = vld [vmem:[%s7438_s1 + $0x18] sm:$0xf] }
 0x1f8   : > { %1522 = vmatpush1.bf16.msra.mxu0 %v6217_v3 }
 0x1f9   : > { %4730 = vmatprep.subr.msk.bf16.mxu0 %vm501_vm0, %v6062_v6  ;;  %1474 = vmatpush1.bf16.msra.mxu1 %v5443_v7 }
 0x1fa   : > { %1475 = vmatprep.subr.bf16.mxu1 %v5448_v10 }
 0x1fc   : > { %1524 = vmatpush1.bf16.msra.mxu0 %v6072_v9 }
 0x1fd   : > { %1476 = vmatpush1.bf16.msra.mxu1 %v5446_v11  ;;  %1674 = vmatprep.subr.bf16.mxu0 %v5454_v12  ;;  %v5494_v11 = vld [vmem:[%s7439_s2 + $0x360] ss:$8 sps:$4 sm:$0xff]   ;;  %v5499_v12 = vld [vmem:[%s7439_s2 + $0x374] ss:$8 sps:$4 sm:$0xff]  }
 0x1fe   : > { %1477 = vmatprep.subr.bf16.mxu1 %v5451_v13  ;;  %v5497_v13 = vld [vmem:[%s7439_s2 + $0x370] ss:$8 sps:$4 sm:$0xff]  }
 0x1ff   : > { %4731 = vmatmul.mubr.msk.bf16.vlgmr.msra.gmra.mrb[20].mxu0 %vm497_vm1, %v4729_v14  ;;  %v5502_v14 = vld [vmem:[%s7439_s2 + $0x384] ss:$8 sps:$4 sm:$0xff]  }
 0x200   : > { %1675 = vmatpush1.bf16.msra.mxu0 %v5452_v15  ;;  %v5505_v15 = vld [vmem:[%s7439_s2 + $0x394] ss:$8 sps:$4 sm:$0xff]  }
 0x201   : > { %1478 = vmatpush1.bf16.msra.mxu1 %v5449_v16  ;;  %1676 = vmatprep.subr.bf16.mxu0 %v5460_v17  ;;  %v5503_v16 = vld [vmem:[%s7439_s2 + $0x390] ss:$8 sps:$4 sm:$0xff]   ;;  %v5514_v17 = vld [vmem:[%s7439_s2 + $0x404] ss:$8 sps:$4 sm:$0xff]  }
 0x202   : > { %1479 = vmatprep.subr.bf16.mxu1 %v5457_v18  ;;  %v5512_v18 = vld [vmem:[%s7439_s2 + $0x400] ss:$8 sps:$4 sm:$0xff]  }
 0x204   : > { %1677 = vmatpush1.bf16.msra.mxu0 %v5458_v19  ;;  %v5509_v19 = vld [vmem:[%s7439_s2 + $0x3a0] ss:$8 sps:$4 sm:$0xff]  }
 0x205   : > { %1480 = vmatpush1.bf16.msra.mxu1 %v5455_v20  ;;  %1678 = vmatprep.subr.bf16.mxu0 %v5466_v21  ;;  %v5517_v20 = vld [vmem:[%s7439_s2 + $0x3b4] ss:$8 sps:$4 sm:$0xff]  }
 0x206   : > { %1481 = vmatprep.subr.bf16.mxu1 %v5463_v22  ;;  %v5520_v21 = vld [vmem:[%s7439_s2 + $0x414] ss:$8 sps:$4 sm:$0xff]   ;;  %v5515_v22 = vld [vmem:[%s7439_s2 + $0x3b0] ss:$8 sps:$4 sm:$0xff]  }
 0x208   : > { %1679 = vmatpush1.bf16.msra.mxu0 %v5464_v23  ;;  %v5518_v23 = vld [vmem:[%s7439_s2 + $0x410] ss:$8 sps:$4 sm:$0xff]  }
 0x209   : > { %1482 = vmatpush1.bf16.msra.mxu1 %v5461_v24  ;;  %1680 = vmatprep.subr.bf16.mxu0 %v5472_v26  ;;  %v5521_v24 = vld [vmem:[%s7439_s2 + $0x3c0] ss:$8 sps:$4 sm:$0xff]  }
 0x20a   : > { %1483 = vmatprep.subr.bf16.mxu1 %v5469_v25  ;;  %v5523_v25 = vld [vmem:[%s7439_s2 + $0x3c4] ss:$8 sps:$4 sm:$0xff]   ;;  %v5524_v26 = vld [vmem:[%s7439_s2 + $0x420] ss:$8 sps:$4 sm:$0xff]  }
 0x20c   : > { %1681 = vmatpush1.bf16.msra.mxu0 %v5470_v28  ;;  %v5529_v28 = vld [vmem:[%s7439_s2 + $0x3d4] ss:$8 sps:$4 sm:$0xff]  }
 0x20d   : > { %1484 = vmatpush1.bf16.msra.mxu1 %v5467_v27  ;;  %1682 = vmatprep.subr.bf16.mxu0 %v5478_v30  ;;  %v5526_v27 = vld [vmem:[%s7439_s2 + $0x424] ss:$8 sps:$4 sm:$0xff]   ;;  %v5527_v30 = vld [vmem:[%s7439_s2 + $0x3d0] ss:$8 sps:$4 sm:$0xff]  }
 0x20e   : > { %1485 = vmatprep.subr.bf16.mxu1 %v5475_v29  ;;  %v5532_v29 = vld [vmem:[%s7439_s2 + $0x434] ss:$8 sps:$4 sm:$0xff]  }
 0x210   : > { %1683 = vmatpush1.bf16.msra.mxu0 %v5476_v32  ;;  %v5535_v32 = vld [vmem:[%s7439_s2 + $0x3e4] ss:$8 sps:$4 sm:$0xff]  }
 0x211   : > { %1486 = vmatpush1.bf16.msra.mxu1 %v5473_v31  ;;  %1684 = vmatprep.subr.bf16.mxu0 %v5484_v34  ;;  %v5530_v31 = vld [vmem:[%s7439_s2 + $0x430] ss:$8 sps:$4 sm:$0xff]   ;;  %v5533_v34 = vld [vmem:[%s7439_s2 + $0x3e0] ss:$8 sps:$4 sm:$0xff]  }
 0x212   : > { %1487 = vmatprep.subr.bf16.mxu1 %v5481_v33  ;;  %v5538_v33 = vld [vmem:[%s7439_s2 + $0x444] ss:$8 sps:$4 sm:$0xff]  }
 0x214   : > { %1685 = vmatpush1.bf16.msra.mxu0 %v5482_v36  ;;  %v5541_v36 = vld [vmem:[%s7439_s2 + $0x454] ss:$8 sps:$4 sm:$0xff]  }
 0x215   : > { %1488 = vmatpush1.bf16.msra.mxu1 %v5479_v35  ;;  %1686 = vmatprep.subr.bf16.mxu0 %v5487_v37  ;;  %v5536_v35 = vld [vmem:[%s7439_s2 + $0x440] ss:$8 sps:$4 sm:$0xff]   ;;  %v5539_v37 = vld [vmem:[%s7439_s2 + $0x450] ss:$8 sps:$4 sm:$0xff]  }
 0x216   : > { %1722 = vmatprep.subr.bf16.mxu1 %v6233_v8 }
 0x218   : > { %1687 = vmatpush1.bf16.msra.mxu0 %v5485_v38  ;;  %v5544_v38 = vld [vmem:[%s7439_s2 + $0x464] ss:$8 sps:$4 sm:$0xff]  }
 0x219   : > { %1688 = vmatprep.subr.bf16.mxu0 %v5490_v40  ;;  %v5547_v40 = vld [vmem:[%s7439_s2 + $0x474] ss:$8 sps:$4 sm:$0xff]  }
 0x21c   : > { %1689 = vmatpush1.bf16.msra.mxu0 %v5488_v39  ;;  %v5542_v39 = vld [vmem:[%s7439_s2 + $0x460] ss:$8 sps:$4 sm:$0xff]  }
 0x21d   : > { %1690 = vmatprep.subr.bf16.mxu0 %v5493_v41  ;;  %v5545_v41 = vld [vmem:[%s7439_s2 + $0x470] ss:$8 sps:$4 sm:$0xff]  }
 0x220   : > { %1691 = vmatpush1.bf16.msra.mxu0 %v5491_v43 }
 0x221   : > { %1925 = vmatprep.subr.bf16.mxu0 %v6233_v8 }
 0x2ba   : > { %v1099_v44 = vpop.f32.mrb[8].mxu1 }
 0x2bb   : > { %v1106_v46 = vadd.f32 %v1099_v44, %v6337_v42  ;;  %v1101_v47 = vpop.f32.mrb[9].mxu1  ;;  %v5496_v42 = vld [vmem:[%s7439_s2 + $0x364] ss:$8 sps:$4 sm:$0xff]  }
 0x2bc   : > { %v1107_v48 = vadd.f32 %v1101_v47, %v6339_v45  ;;  %v1103_v49 = vpop.f32.mrb[10].mxu1 }
 0x2bd   : > { %v1104_v50 = vpop.f32.mrb[11].mxu1 }
 0x2c6   : > { %v1350_v51 = vpop.f32.mrb[12].mxu1  ;;  %v1302_v52 = vpop.f32.mrb[16].mxu0 }
 0x2c7   : > { %v1357_v53 = vpack.c.bf16 %v1350_v51, %v1350_v51  ;;  %v6477_v54 = vadd.f32 %v1302_v52, %v1106_v46  ;;  %v1352_v55 = vpop.f32.mrb[13].mxu1  ;;  %v1304_v56 = vpop.f32.mrb[17].mxu0 }
 0x2c8   : > { %v1358_v57 = vpack.c.bf16 %v1352_v55, %v1352_v55  ;;  %v6479_v58 = vadd.f32 %v1304_v56, %v1107_v48  ;;  %v1306_v59 = vpop.f32.mrb[18].mxu0  ;;  %v1354_v8 = vpop.f32.mrb[14].mxu1 }
 0x2c9   : > { %v1307_v60 = vpop.f32.mrb[19].mxu0  ;;  %v1355_v61 = vpop.f32.mrb[15].mxu1 }
 0x2ca   : > { %4728 = vmatprep.mubr.msk.bf16.mxu1 %vm726_vm2, %v1358_v57 }
 0x2cb   : > { %1504 = vmatmul.mubr.bf16.vlgmr.msra.gmra.mrb[16].mxu1 %v1357_v53 }
 0x2cc   : > { %1723 = vmatpush1.bf16.msra.mxu1 %v6202_v62  ;;  %1754 = vmatprep.mubr.bf16.mxu1 %v5918_v0 }
 0x2cd   : > { %1724 = vmatprep.subr.bf16.mxu1 %v6207_v63 }
 0x2d0   : > { %1725 = vmatpush1.bf16.msra.mxu1 %v6217_v3 }
 0x2d1   : > { %4770 = vmatprep.subr.msk.bf16.mxu1 %vm501_vm0, %v6062_v6 }
 0x2d2   : > { %v1553_v45 = vpop.f32.mrb[20].mxu0 }
 0x2d3   : > { %v1555_v1 = vpop.f32.mrb[21].mxu0  ;;  %v1560_v7 = vpack.c.bf16 %v1553_v45, %v1553_v45 }
 0x2d4   : > { %v1561_v2 = vpack.c.bf16 %v1555_v1, %v1555_v1  ;;  %1727 = vmatpush1.bf16.msra.mxu1 %v6072_v9  ;;  %v1557_v4 = vpop.f32.mrb[22].mxu0 }
 0x2d5   : > { %v1558_v10 = vpop.f32.mrb[23].mxu0  ;;  %1877 = vmatprep.subr.bf16.mxu1 %v5496_v42 }
 0x2d6   : > { %4768 = vmatprep.mubr.msk.bf16.mxu0 %vm726_vm2, %v1561_v2  ;;  %v5601_v10 = vld [vmem:[%s7442_s5 + $0x14] ss:$8 sps:$4 sm:$0xff]  }
 0x2d7   : > { %4771 = vmatmul.mubr.msk.bf16.vlgmr.msra.gmra.mrb[20].mxu1 %vm497_vm1, %v4769_v5  ;;  %1707 = vmatmul.mubr.bf16.vlgmr.msra.gmra.mrb[24].mxu0 %v1560_v7  ;;  %v5596_v5 = vld [vmem:[%s7442_s5] ss:$8 sps:$4 sm:$0xff]   ;;  %v5598_v7 = vld [vmem:[%s7442_s5 + $0x4] ss:$8 sps:$4 sm:$0xff]  }
 0x2d8   : > { %1926 = vmatpush1.bf16.msra.mxu0 %v6202_v62  ;;  %1957 = vmatprep.mubr.bf16.mxu0 %v5918_v0  ;;  %v5500_v62 = vld [vmem:[%s7439_s2 + $0x380] ss:$8 sps:$4 sm:$0xff]  }
 0x2d9   : > { %1927 = vmatprep.subr.bf16.mxu0 %v6207_v63  ;;  %1878 = vmatpush1.bf16.msra.mxu1 %v5494_v11  ;;  %v5508_v63 = vld [vmem:[%s7439_s2 + $0x3f4] ss:$8 sps:$4 sm:$0xff]   ;;  %v5599_v11 = vld [vmem:[%s7442_s5 + $0x10] ss:$8 sps:$4 sm:$0xff]  }
 0x2da   : > { %1879 = vmatprep.subr.bf16.mxu1 %v5499_v12  ;;  %v5604_v12 = vld [vmem:[%s7442_s5 + $0x24] ss:$8 sps:$4 sm:$0xff]  }
 0x2dc   : > { %1928 = vmatpush1.bf16.msra.mxu0 %v6217_v3  ;;  %v5506_v3 = vld [vmem:[%s7439_s2 + $0x3f0] ss:$8 sps:$4 sm:$0xff]  }
 0x2dd   : > { %4810 = vmatprep.subr.msk.bf16.mxu0 %vm501_vm0, %v6062_v6  ;;  %1880 = vmatpush1.bf16.msra.mxu1 %v5497_v13  ;;  %v4809_v6 = vld [vmem:[%s7438_s1 + $0x1c] sm:$0xf]  ;;  %v5602_v13 = vld [vmem:[%s7442_s5 + $0x20] ss:$8 sps:$4 sm:$0xff]  }
 0x2de   : > { %1881 = vmatprep.subr.bf16.mxu1 %v5502_v14  ;;  %v5607_v14 = vld [vmem:[%s7442_s5 + $0x34] ss:$8 sps:$4 sm:$0xff]  }
 0x2e0   : > { %1930 = vmatpush1.bf16.msra.mxu0 %v6072_v9  ;;  %v5511_v9 = vld [vmem:[%s7439_s2 + $0x3a4] ss:$8 sps:$4 sm:$0xff]  }
 0x2e1   : > { %1882 = vmatpush1.bf16.msra.mxu1 %v5500_v62  ;;  %2080 = vmatprep.subr.bf16.mxu0 %v5508_v63  ;;  %v5605_v62 = vld [vmem:[%s7442_s5 + $0x30] ss:$8 sps:$4 sm:$0xff]   ;;  %v5610_v63 = vld [vmem:[%s7442_s5 + $0x44] ss:$8 sps:$4 sm:$0xff]  }
 0x2e2   : > { %1883 = vmatprep.subr.bf16.mxu1 %v5505_v15  ;;  %v2125_v15 = vlaneseq }
 0x2e3   : > { %4811 = vmatmul.mubr.msk.bf16.vlgmr.msra.gmra.mrb[28].mxu0 %vm497_vm1, %v4809_v6  ;;  %v5608_v6 = vld [vmem:[%s7442_s5 + $0x40] ss:$8 sps:$4 sm:$0xff]  }
 0x2e4   : > { %2081 = vmatpush1.bf16.msra.mxu0 %v5506_v3 }
 0x2e5   : > { %1884 = vmatpush1.bf16.msra.mxu1 %v5503_v16  ;;  %2082 = vmatprep.subr.bf16.mxu0 %v5514_v17  ;;  %v5613_v16 = vld [vmem:[%s7442_s5 + $0x54] ss:$8 sps:$4 sm:$0xff]  }
 0x2e6   : > { %1885 = vmatprep.subr.bf16.mxu1 %v5511_v9 }
 0x2e8   : > { %2083 = vmatpush1.bf16.msra.mxu0 %v5512_v18 }
 0x2e9   : > { %1886 = vmatpush1.bf16.msra.mxu1 %v5509_v19  ;;  %2084 = vmatprep.subr.bf16.mxu0 %v5520_v21  ;;  %v6651_v21 = vshrl.u32 %v2125_v15, 7  ;;  %v5559_v15 = vld [vmem:[%s7442_s5 + $0x134] ss:$8 sps:$4 sm:$0xff]  }
 0x2ea   : > { %1887 = vmatprep.subr.bf16.mxu1 %v5517_v20 }
 0x2ec   : > { %2085 = vmatpush1.bf16.msra.mxu0 %v5518_v23  ;;  %v5616_v23 = vld [vmem:[%s7442_s5 + $0x64] ss:$8 sps:$4 sm:$0xff]  }
 0x2ed   : > { %1888 = vmatpush1.bf16.msra.mxu1 %v5515_v22  ;;  %2086 = vmatprep.subr.bf16.mxu0 %v5526_v27  ;;  %v5611_v22 = vld [vmem:[%s7442_s5 + $0x50] ss:$8 sps:$4 sm:$0xff]   ;;  %v6669_v27 = vsub.s32 1, %v6651_v21 }
 0x2ee   : > { %1889 = vmatprep.subr.bf16.mxu1 %v5523_v25  ;;  %v5614_v25 = vld [vmem:[%s7442_s5 + $0x60] ss:$8 sps:$4 sm:$0xff]  }
 0x2f0   : > { %2087 = vmatpush1.bf16.msra.mxu0 %v5524_v26  ;;  %v2123_v26 = vld [vmem:[%s7440_s3] sm:$0x3] }
 0x2f1   : > { %1890 = vmatpush1.bf16.msra.mxu1 %v5521_v24  ;;  %2088 = vmatprep.subr.bf16.mxu0 %v5532_v29  ;;  %v6660_v24 = vsub.s32 0, %v6651_v21 }
 0x2f2   : > { %1891 = vmatprep.subr.bf16.mxu1 %v5529_v28  ;;  %v5619_v28 = vld [vmem:[%s7442_s5 + $0x74] ss:$8 sps:$4 sm:$0xff]  }
 0x2f3   : > { %v2128_v29 = vrot.slane %v2123_v26, %v6660_v24 }
 0x2f4   : > { %2089 = vmatpush1.bf16.msra.mxu0 %v5530_v31 }
 0x2f5   : > { %1892 = vmatpush1.bf16.msra.mxu1 %v5527_v30  ;;  %2090 = vmatprep.subr.bf16.mxu0 %v5538_v33  ;;  %v5617_v30 = vld [vmem:[%s7442_s5 + $0x70] ss:$8 sps:$4 sm:$0xff]   ;;  %v5622_v33 = vld [vmem:[%s7442_s5 + $0x84] ss:$8 sps:$4 sm:$0xff]  }
 0x2f6   : > { %1893 = vmatprep.subr.bf16.mxu1 %v5535_v32  ;;  %v2132_v32 = vrot.slane %v2123_v26, %v6669_v27  ;;  %v5577_v26 = vld [vmem:[%s7442_s5 + $0x194] ss:$8 sps:$4 sm:$0xff]  }
 0x2f8   : > { %2091 = vmatpush1.bf16.msra.mxu0 %v5536_v35 }
 0x2f9   : > { %1894 = vmatpush1.bf16.msra.mxu1 %v5533_v34  ;;  %2092 = vmatprep.subr.bf16.mxu0 %v5541_v36 }
 0x2fc   : > { %2093 = vmatpush1.bf16.msra.mxu0 %v5539_v37 }
 0x2fd   : > { %2094 = vmatprep.subr.bf16.mxu0 %v5544_v38 }
 0x300   : > { %2095 = vmatpush1.bf16.msra.mxu0 %v5542_v39 }
 0x301   : > { %2096 = vmatprep.subr.bf16.mxu0 %v5547_v40  ;;  %v5620_v40 = vld [vmem:[%s7442_s5 + $0x80] ss:$8 sps:$4 sm:$0xff]  }
 0x304   : > { %2097 = vmatpush1.bf16.msra.mxu0 %v5545_v41 }
 0x305   : > { %2680 = vmatprep.subr.bf16.mxu0 %v5598_v7  ;;  %v5550_v7 = vld [vmem:[%s7442_s5 + $0x104] ss:$8 sps:$4 sm:$0xff]  }
 0x39e   : > { %v1505_v43 = vpop.f32.mrb[16].mxu1 }
 0x39f   : > { %v1512_v44 = vadd.f32 %v1505_v43, %v6477_v54  ;;  %v1507_v46 = vpop.f32.mrb[17].mxu1  ;;  %v5625_v43 = vld [vmem:[%s7442_s5 + $0x94] ss:$8 sps:$4 sm:$0xff]  }
 0x3a0   : > { %v1513_v47 = vadd.f32 %v1507_v46, %v6479_v58  ;;  %v1509_v48 = vpop.f32.mrb[18].mxu1 }
 0x3a1   : > { %v1510_v49 = vpop.f32.mrb[19].mxu1  ;;  %v5623_v48 = vld [vmem:[%s7442_s5 + $0x90] ss:$8 sps:$4 sm:$0xff]  }
 0x3aa   : > { %v1756_v50 = vpop.f32.mrb[20].mxu1  ;;  %v1708_v51 = vpop.f32.mrb[24].mxu0 }
 0x3ab   : > { %v1763_v52 = vpack.c.bf16 %v1756_v50, %v1756_v50  ;;  %v1715_v53 = vadd.f32 %v1708_v51, %v1512_v44  ;;  %v1758_v55 = vpop.f32.mrb[21].mxu1  ;;  %v1710_v56 = vpop.f32.mrb[25].mxu0  ;;  %v5628_v50 = vld [vmem:[%s7442_s5 + $0xa4] ss:$8 sps:$4 sm:$0xff]   ;;  %v5626_v51 = vld [vmem:[%s7442_s5 + $0xa0] ss:$8 sps:$4 sm:$0xff]  }
 0x3ac   : > { %v1764_v57 = vpack.c.bf16 %v1758_v55, %v1758_v55  ;;  %v1716_v59 = vadd.f32 %v1710_v56, %v1513_v47  ;;  %v1712_v8 = vpop.f32.mrb[26].mxu0  ;;  %v1760_v60 = vpop.f32.mrb[22].mxu1  ;;  %v5634_v55 = vld [vmem:[%s7442_s5 + $0xc4] ss:$8 sps:$4 sm:$0xff]  }
 0x3ad   : > { %v1713_v61 = vpop.f32.mrb[27].mxu0  ;;  %v1761_v42 = vpop.f32.mrb[23].mxu1  ;;  %v5637_v60 = vld [vmem:[%s7442_s5 + $0xd4] ss:$8 sps:$4 sm:$0xff]  }
 0x3ae   : > { %4808 = vmatprep.mubr.msk.bf16.mxu1 %vm726_vm2, %v1764_v57  ;;  %v5632_v57 = vld [vmem:[%s7442_s5 + $0xc0] ss:$8 sps:$4 sm:$0xff]  }
 0x3af   : > { %1910 = vmatmul.mubr.bf16.vlgmr.msra.gmra.mrb[24].mxu1 %v1763_v52  ;;  %v5631_v52 = vld [vmem:[%s7442_s5 + $0xb4] ss:$8 sps:$4 sm:$0xff]  }
 0x3b0   : > { %2195 = vmatprep.mubr.bf16.mxu1 %v5918_v0 }
 0x3b6   : > { %v1959_v54 = vpop.f32.mrb[28].mxu0 }
 0x3b7   : > { %v1961_v58 = vpop.f32.mrb[29].mxu0  ;;  %v1966_v2 = vpack.c.bf16 %v1959_v54, %v1959_v54 }
 0x3b8   : > { %v1967_v45 = vpack.c.bf16 %v1961_v58, %v1961_v58  ;;  %v1963_v1 = vpop.f32.mrb[30].mxu0 }
 0x3b9   : > { %v1964_v4 = vpop.f32.mrb[31].mxu0 }
 0x3ba   : > { %4848 = vmatprep.mubr.msk.bf16.mxu0 %vm726_vm2, %v1967_v45  ;;  %v5635_v45 = vld [vmem:[%s7442_s5 + $0xd0] ss:$8 sps:$4 sm:$0xff]  }
 0x3bb   : > { %2113 = vmatmul.mubr.bf16.vlgmr.msra.gmra.mrb[32].mxu0 %v1966_v2  ;;  %v5640_v2 = vld [vmem:[%s7442_s5 + $0xe4] ss:$8 sps:$4 sm:$0xff]  }
 0x3bc   : > { %2681 = vmatpush1.bf16.msra.mxu0 %v5596_v5  ;;  %v2151_v5 = vld [vmem:[%s7441_s4] sm:$0x3] }
 0x3bd   : > { %2682 = vmatprep.subr.bf16.mxu0 %v5601_v10  ;;  %v5638_v10 = vld [vmem:[%s7442_s5 + $0xe0] ss:$8 sps:$4 sm:$0xff]  }
 0x3c0   : > { %2683 = vmatpush1.bf16.msra.mxu0 %v5599_v11  ;;  %v5548_v11 = vld [vmem:[%s7442_s5 + $0x100] ss:$8 sps:$4 sm:$0xff]  }
 0x3c1   : > { %2684 = vmatprep.subr.bf16.mxu0 %v5604_v12  ;;  %v4853_v12 = vld [vmem:[%s7441_s4 + $0x2] sm:$0x3] }
 0x3c4   : > { %2685 = vmatpush1.bf16.msra.mxu0 %v5602_v13  ;;  %v5553_v13 = vld [vmem:[%s7442_s5 + $0x114] ss:$8 sps:$4 sm:$0xff]  }
 0x3c5   : > { %2686 = vmatprep.subr.bf16.mxu0 %v5607_v14  ;;  %v5551_v14 = vld [vmem:[%s7442_s5 + $0x110] ss:$8 sps:$4 sm:$0xff]  }
 0x3c8   : > { %2687 = vmatpush1.bf16.msra.mxu0 %v5605_v62  ;;  %v5556_v62 = vld [vmem:[%s7442_s5 + $0x124] ss:$8 sps:$4 sm:$0xff]  }
 0x3c9   : > { %2688 = vmatprep.subr.bf16.mxu0 %v5610_v63  ;;  %v5554_v63 = vld [vmem:[%s7442_s5 + $0x120] ss:$8 sps:$4 sm:$0xff]  }
 0x3cc   : > { %2689 = vmatpush1.bf16.msra.mxu0 %v5608_v6  ;;  %v5557_v6 = vld [vmem:[%s7442_s5 + $0x130] ss:$8 sps:$4 sm:$0xff]  }
 0x3cd   : > { %2690 = vmatprep.subr.bf16.mxu0 %v5613_v16  ;;  %v5560_v16 = vld [vmem:[%s7442_s5 + $0x140] ss:$8 sps:$4 sm:$0xff]  }
 0x3d0   : > { %2691 = vmatpush1.bf16.msra.mxu0 %v5611_v22  ;;  %v5569_v22 = vld [vmem:[%s7442_s5 + $0x170] ss:$8 sps:$4 sm:$0xff]  }
 0x3d1   : > { %2692 = vmatprep.subr.bf16.mxu0 %v5616_v23  ;;  %v5574_v23 = vld [vmem:[%s7442_s5 + $0x184] ss:$8 sps:$4 sm:$0xff]  }
 0x3d4   : > { %2693 = vmatpush1.bf16.msra.mxu0 %v5614_v25  ;;  %v5572_v25 = vld [vmem:[%s7442_s5 + $0x180] ss:$8 sps:$4 sm:$0xff]  }
 0x3d5   : > { %2694 = vmatprep.subr.bf16.mxu0 %v5619_v28  ;;  %v5575_v28 = vld [vmem:[%s7442_s5 + $0x190] ss:$8 sps:$4 sm:$0xff]  }
 0x3d8   : > { %2695 = vmatpush1.bf16.msra.mxu0 %v5617_v30  ;;  %v5578_v30 = vld [vmem:[%s7442_s5 + $0x1a0] ss:$8 sps:$4 sm:$0xff]  }
 0x3d9   : > { %2696 = vmatprep.subr.bf16.mxu0 %v5622_v33  ;;  %v5586_v33 = vld [vmem:[%s7442_s5 + $0x1c4] ss:$8 sps:$4 sm:$0xff]  }
 0x3dc   : > { %2697 = vmatpush1.bf16.msra.mxu0 %v5620_v40  ;;  %v5593_v40 = vld [vmem:[%s7442_s5 + $0x1f0] ss:$8 sps:$4 sm:$0xff]  }
 0x3dd   : > { %2698 = vmatprep.subr.bf16.mxu0 %v5625_v43  ;;  %v5641_v43 = vld [vmem:[%s7442_s5 + $0xf0] ss:$8 sps:$4 sm:$0xff]  }
 0x3e0   : > { %2699 = vmatpush1.bf16.msra.mxu0 %v5623_v48 }
 0x3e1   : > { %2700 = vmatprep.subr.bf16.mxu0 %v5628_v50  ;;  %v5644_v50 = vld [vmem:[%s7442_s5 + $0x200] ss:$8 sps:$4 sm:$0xff]  }
 0x3e4   : > { %2701 = vmatpush1.bf16.msra.mxu0 %v5626_v51 }
 0x3e5   : > { %2702 = vmatprep.subr.bf16.mxu0 %v5631_v52 }
 0x482   : > { %v1911_v3 = vpop.f32.mrb[24].mxu1 }
 0x483   : > { %v1918_v17 = vadd.f32 %v1911_v3, %v1715_v53  ;;  %v1913_v9 = vpop.f32.mrb[25].mxu1  ;;  %v5629_v53 = vld [vmem:[%s7442_s5 + $0xb0] ss:$8 sps:$4 sm:$0xff]   ;;  %v5562_v3 = vld [vmem:[%s7442_s5 + $0x144] ss:$8 sps:$4 sm:$0xff]  }
 0x484   : > { %v1919_v18 = vadd.f32 %v1913_v9, %v1716_v59  ;;  %v1915_v19 = vpop.f32.mrb[26].mxu1  ;;  %2703 = vmatpush1.bf16.msra.mxu0 %v5629_v53  ;;  %v5563_v9 = vld [vmem:[%s7442_s5 + $0x150] ss:$8 sps:$4 sm:$0xff]   ;;  %v5649_v53 = vld [vmem:[%s7442_s5 + $0x214] ss:$8 sps:$4 sm:$0xff]  }
 0x485   : > { %v1916_v20 = vpop.f32.mrb[27].mxu1  ;;  %2704 = vmatprep.subr.bf16.mxu0 %v5634_v55  ;;  %v5566_v19 = vld [vmem:[%s7442_s5 + $0x160] ss:$8 sps:$4 sm:$0xff]   ;;  %v5647_v55 = vld [vmem:[%s7442_s5 + $0x210] ss:$8 sps:$4 sm:$0xff]  }
 0x486   : > { %v5571_v20 = vld [vmem:[%s7442_s5 + $0x174] ss:$8 sps:$4 sm:$0xff]  }
 0x488   : > { %2705 = vmatpush1.bf16.msra.mxu0 %v5632_v57 }
 0x489   : > { %2706 = vmatprep.subr.bf16.mxu0 %v5637_v60 }
 0x48c   : > { %2707 = vmatpush1.bf16.msra.mxu0 %v5635_v45  ;;  %v5656_v45 = vld [vmem:[%s7442_s5 + $0x230] ss:$8 sps:$4 sm:$0xff]  }
 0x48d   : > { %2708 = vmatprep.subr.bf16.mxu0 %v5640_v2  ;;  %v5664_v2 = vld [vmem:[%s7442_s5 + $0x244] ss:$8 sps:$4 sm:$0xff]  }
 0x48e   : > { %v2114_v31 = vpop.f32.mrb[32].mxu0 }
 0x48f   : > { %v2121_v34 = vadd.f32 %v2114_v31, %v1918_v17  ;;  %v2116_v35 = vpop.f32.mrb[33].mxu0  ;;  %v5565_v17 = vld [vmem:[%s7442_s5 + $0x154] ss:$8 sps:$4 sm:$0xff]  }
 0x490   : > { %v2122_v36 = vadd.f32 %v2116_v35, %v1919_v18  ;;  %v2118_v37 = vpop.f32.mrb[34].mxu0  ;;  %2709 = vmatpush1.bf16.msra.mxu0 %v5638_v10  ;;  %v5568_v18 = vld [vmem:[%s7442_s5 + $0x164] ss:$8 sps:$4 sm:$0xff]   ;;  %v5583_v31 = vld [vmem:[%s7442_s5 + $0x1b4] ss:$8 sps:$4 sm:$0xff]  }
 0x491   : > { %v2135_v38 = vadd.f32 %v2128_v29, %v2121_v34  ;;  %v2119_v39 = vpop.f32.mrb[35].mxu0  ;;  %v5580_v29 = vld [vmem:[%s7442_s5 + $0x1a4] ss:$8 sps:$4 sm:$0xff]   ;;  %v5584_v34 = vld [vmem:[%s7442_s5 + $0x1c0] ss:$8 sps:$4 sm:$0xff]  }
 0x492   : > { %v2136_v41 = vadd.f32 %v2132_v32, %v2122_v36  ;;  %v5581_v32 = vld [vmem:[%s7442_s5 + $0x1b0] ss:$8 sps:$4 sm:$0xff]   ;;  %v5589_v35 = vld [vmem:[%s7442_s5 + $0x1d4] ss:$8 sps:$4 sm:$0xff]   ;;  %v5592_v37 = vld [vmem:[%s7442_s5 + $0x1e4] ss:$8 sps:$4 sm:$0xff]  }
 0x493   : > { %v2139_v44 = vmin.f32 %v2135_v38, 0.0  ;;  %vm2137_vm3 = vcmp.gt.f32.partialorder %v2135_v38, 0.0  ;;  %v5587_v36 = vld [vmem:[%s7442_s5 + $0x1d0] ss:$8 sps:$4 sm:$0xff]   ;;  %v5595_v39 = vld [vmem:[%s7442_s5 + $0x1f4] ss:$8 sps:$4 sm:$0xff]  }
 0x494   : > { %v2140_v46 = vmin.f32 %v2136_v41, 0.0  ;;  %vm2138_vm4 = vcmp.gt.f32.partialorder %v2136_v41, 0.0  ;;  %v5670_v10 = vld [vmem:[%s7442_s5 + $0x254] ss:$8 sps:$4 sm:$0xff]  }
 0x495   : > { %v2141_v47 = vmul.f32 1.442695, %v2139_v44  ;;  %v5646_v44 = vld [vmem:[%s7442_s5 + $0x204] ss:$8 sps:$4 sm:$0xff]  }
 0x496   : > { %v2143_v49 = vmul.f32 1.442695, %v2140_v46 }
 0x497   : > { %5832 = vpow2.f32 %v2141_v47 }
 0x498   : > { %5834 = vpow2.f32 %v2143_v49 }
 0x4a1   : > { %v5833_v56 = vpop.eup %5832 }
 0x4a2   : > { %v5835_v59 = vpop.eup %5834  ;;  %v4849_v8 = vadd.f32 -1.0, %v5833_v56  ;;  %v5652_v56 = vld [vmem:[%s7442_s5 + $0x224] ss:$8 sps:$4 sm:$0xff]  }
 0x4a3   : > { %v4850_v61 = vadd.f32 -1.0, %v5835_v59 }
 0x4a4   : > { %v2147_v42 = vsel %vm2137_vm3, %v2135_v38, %v4849_v8  ;;  %v5590_v38 = vld [vmem:[%s7442_s5 + $0x1e0] ss:$8 sps:$4 sm:$0xff]  }
 0x4a5   : > { %v2148_v54 = vsel %vm2138_vm4, %v2136_v41, %v4850_v61  ;;  %v2149_v58 = vpack.c.bf16 %v2147_v42, %v2147_v42  ;;  %v5643_v41 = vld [vmem:[%s7442_s5 + $0xf4] ss:$8 sps:$4 sm:$0xff]  }
 0x4a6   : > { %v6715_v1 = vpack.c.bf16 %v2148_v54, %v2148_v54  ;;  %2710 = vmatprep.subr.bf16.mxu0 %v5643_v41  ;;  %v5650_v54 = vld [vmem:[%s7442_s5 + $0x220] ss:$8 sps:$4 sm:$0xff]  }
 0x4a7   : > { %v6721_v4 = vsel %vm2156_vm5, %v2149_v58, 0  ;;  %2711 = vmatpush1.bf16.msra.mxu0 %v5641_v43  ;;  %v5658_v58 = vld [vmem:[%s7442_s5 + $0x234] ss:$8 sps:$4 sm:$0xff]   ;;  %v5710_v41 = vld [vmem:[%s7442_s5 + $0x2c0] ss:$8 sps:$4 sm:$0xff]  }
 0x4a8   : > { %4851 = vmatprep.subr.msk.bf16.mxu1 %vm2156_vm5, %v6715_v1  ;;  %2962 = vmatprep.subr.bf16.mxu0 %v5646_v44  ;;  %v5712_v43 = vld [vmem:[%s7442_s5 + $0x2c4] ss:$8 sps:$4 sm:$0xff]   ;;  %v5713_v44 = vld [vmem:[%s7442_s5 + $0x3a0] ss:$8 sps:$4 sm:$0xff]  }
 0x4a9   : > { %2164 = vmatpush1.bf16.msra.mxu1 %v6721_v4 }
 0x4aa   : > { %4854 = vmatprep.subr.msk.bf16.mxu1 %vm2156_vm5, %v6715_v1 }
 0x4ac   : > { %4852 = vmatmul.mubr.msk.bf16.vlgmr.msra.gmra.mrb[28].mxu1 %vm2152_vm6, %v2151_v5  ;;  %v4952_v5 = vld [vmem:[%s7441_s4 + $0x4] sm:$0x3] }
 0x4ad   : > { %2244 = vmatpush1.bf16.msra.mxu1 %v6721_v4  ;;  %2275 = vmatprep.mubr.bf16.mxu1 %v5918_v0 }
 0x4ae   : > { %2479 = vmatprep.subr.bf16.mxu1 %v5550_v7  ;;  %v5655_v7 = vld [vmem:[%s7442_s5 + $0x304] ss:$8 sps:$4 sm:$0xff]  }
 0x4b4   : > { %4855 = vmatmul.mubr.msk.bf16.vlgmr.msra.gmra.mrb[32].mxu1 %vm2152_vm6, %v4853_v12  ;;  %v5676_v12 = vld [vmem:[%s7442_s5 + $0x264] ss:$8 sps:$4 sm:$0xff]  }
 0x4b5   : > { %2480 = vmatpush1.bf16.msra.mxu1 %v5548_v11  ;;  %v5668_v11 = vld [vmem:[%s7442_s5 + $0x250] ss:$8 sps:$4 sm:$0xff]  }
 0x4b6   : > { %2481 = vmatprep.subr.bf16.mxu1 %v5553_v13  ;;  %v5019_v13 = vld [vmem:[%s7441_s4 + $0x6] sm:$0x3] }
 0x4b9   : > { %2482 = vmatpush1.bf16.msra.mxu1 %v5551_v14  ;;  %v5661_v14 = vld [vmem:[%s7442_s5 + $0x314] ss:$8 sps:$4 sm:$0xff]  }
 0x4ba   : > { %2483 = vmatprep.subr.bf16.mxu1 %v5556_v62  ;;  %v5674_v62 = vld [vmem:[%s7442_s5 + $0x260] ss:$8 sps:$4 sm:$0xff]  }
 0x4bd   : > { %2484 = vmatpush1.bf16.msra.mxu1 %v5554_v63  ;;  %v5682_v63 = vld [vmem:[%s7442_s5 + $0x274] ss:$8 sps:$4 sm:$0xff]  }
 0x4be   : > { %2485 = vmatprep.subr.bf16.mxu1 %v5559_v15  ;;  %v5659_v15 = vld [vmem:[%s7442_s5 + $0x310] ss:$8 sps:$4 sm:$0xff]  }
 0x4c1   : > { %2486 = vmatpush1.bf16.msra.mxu1 %v5557_v6  ;;  %v5667_v6 = vld [vmem:[%s7442_s5 + $0x324] ss:$8 sps:$4 sm:$0xff]  }
 0x4c2   : > { %2487 = vmatprep.subr.bf16.mxu1 %v5562_v3  ;;  %v5680_v3 = vld [vmem:[%s7442_s5 + $0x270] ss:$8 sps:$4 sm:$0xff]  }
 0x4c5   : > { %2488 = vmatpush1.bf16.msra.mxu1 %v5560_v16  ;;  %v5688_v16 = vld [vmem:[%s7442_s5 + $0x284] ss:$8 sps:$4 sm:$0xff]  }
 0x4c6   : > { %2489 = vmatprep.subr.bf16.mxu1 %v5565_v17  ;;  %v5665_v17 = vld [vmem:[%s7442_s5 + $0x320] ss:$8 sps:$4 sm:$0xff]  }
 0x4c9   : > { %2490 = vmatpush1.bf16.msra.mxu1 %v5563_v9  ;;  %v5673_v9 = vld [vmem:[%s7442_s5 + $0x334] ss:$8 sps:$4 sm:$0xff]  }
 0x4ca   : > { %2491 = vmatprep.subr.bf16.mxu1 %v5568_v18  ;;  %v5686_v18 = vld [vmem:[%s7442_s5 + $0x280] ss:$8 sps:$4 sm:$0xff]  }
 0x4cd   : > { %2492 = vmatpush1.bf16.msra.mxu1 %v5566_v19  ;;  %v5694_v19 = vld [vmem:[%s7442_s5 + $0x294] ss:$8 sps:$4 sm:$0xff]  }
 0x4ce   : > { %2493 = vmatprep.subr.bf16.mxu1 %v5571_v20  ;;  %v5671_v20 = vld [vmem:[%s7442_s5 + $0x330] ss:$8 sps:$4 sm:$0xff]  }
 0x4d1   : > { %2494 = vmatpush1.bf16.msra.mxu1 %v5569_v22  ;;  %v5679_v22 = vld [vmem:[%s7442_s5 + $0x344] ss:$8 sps:$4 sm:$0xff]  }
 0x4d2   : > { %2495 = vmatprep.subr.bf16.mxu1 %v5574_v23  ;;  %v5692_v23 = vld [vmem:[%s7442_s5 + $0x290] ss:$8 sps:$4 sm:$0xff]  }
 0x4d5   : > { %2496 = vmatpush1.bf16.msra.mxu1 %v5572_v25  ;;  %v5700_v25 = vld [vmem:[%s7442_s5 + $0x2a4] ss:$8 sps:$4 sm:$0xff]  }
 0x4d6   : > { %2497 = vmatprep.subr.bf16.mxu1 %v5577_v26  ;;  %v5677_v26 = vld [vmem:[%s7442_s5 + $0x340] ss:$8 sps:$4 sm:$0xff]  }
 0x4d9   : > { %2498 = vmatpush1.bf16.msra.mxu1 %v5575_v28  ;;  %v5685_v28 = vld [vmem:[%s7442_s5 + $0x354] ss:$8 sps:$4 sm:$0xff]  }
 0x4da   : > { %2499 = vmatprep.subr.bf16.mxu1 %v5580_v29  ;;  %v5698_v29 = vld [vmem:[%s7442_s5 + $0x2a0] ss:$8 sps:$4 sm:$0xff]  }
 0x4dd   : > { %2500 = vmatpush1.bf16.msra.mxu1 %v5578_v30  ;;  %v5683_v30 = vld [vmem:[%s7442_s5 + $0x350] ss:$8 sps:$4 sm:$0xff]  }
 0x4de   : > { %2501 = vmatprep.subr.bf16.mxu1 %v5583_v31  ;;  %v5691_v31 = vld [vmem:[%s7442_s5 + $0x364] ss:$8 sps:$4 sm:$0xff]  }
 0x4e1   : > { %2502 = vmatpush1.bf16.msra.mxu1 %v5581_v32  ;;  %v5689_v32 = vld [vmem:[%s7442_s5 + $0x360] ss:$8 sps:$4 sm:$0xff]  }
 0x4e2   : > { %2503 = vmatprep.subr.bf16.mxu1 %v5586_v33  ;;  %v5697_v33 = vld [vmem:[%s7442_s5 + $0x374] ss:$8 sps:$4 sm:$0xff]  }
 0x4e5   : > { %2504 = vmatpush1.bf16.msra.mxu1 %v5584_v34  ;;  %v5695_v34 = vld [vmem:[%s7442_s5 + $0x370] ss:$8 sps:$4 sm:$0xff]  }
 0x4e6   : > { %2505 = vmatprep.subr.bf16.mxu1 %v5589_v35  ;;  %v5703_v35 = vld [vmem:[%s7442_s5 + $0x384] ss:$8 sps:$4 sm:$0xff]  }
 0x4e9   : > { %2506 = vmatpush1.bf16.msra.mxu1 %v5587_v36  ;;  %v5701_v36 = vld [vmem:[%s7442_s5 + $0x380] ss:$8 sps:$4 sm:$0xff]  }
 0x4ea   : > { %2507 = vmatprep.subr.bf16.mxu1 %v5592_v37  ;;  %v5706_v37 = vld [vmem:[%s7442_s5 + $0x2b4] ss:$8 sps:$4 sm:$0xff]  }
 0x4ed   : > { %2508 = vmatpush1.bf16.msra.mxu1 %v5590_v38  ;;  %v5709_v38 = vld [vmem:[%s7442_s5 + $0x394] ss:$8 sps:$4 sm:$0xff]  }
 0x4ee   : > { %2509 = vmatprep.subr.bf16.mxu1 %v5595_v39  ;;  %v5704_v39 = vld [vmem:[%s7442_s5 + $0x2b0] ss:$8 sps:$4 sm:$0xff]  }
 0x4f1   : > { %2510 = vmatpush1.bf16.msra.mxu1 %v5593_v40  ;;  %v5707_v40 = vld [vmem:[%s7442_s5 + $0x390] ss:$8 sps:$4 sm:$0xff]  }
 0x4f2   : > { %4953 = vmatprep.subr.msk.bf16.mxu1 %vm2156_vm5, %v6715_v1 }
 0x57f   : > { %v2197_v46 = vpop.f32.mrb[28].mxu1 }
 0x580   : > { %v2199_v47 = vpop.f32.mrb[29].mxu1  ;;  %v2204_v51 = vpack.c.bf16 %v2197_v46, %v2197_v46  ;;  %v5715_v46 = vld [vmem:[%s7442_s5 + $0x3a4] ss:$8 sps:$4 sm:$0xff]  }
 0x581   : > { %v2205_v48 = vpack.c.bf16 %v2199_v47, %v2199_v47  ;;  %v2201_v49 = vpop.f32.mrb[30].mxu1  ;;  %v5718_v47 = vld [vmem:[%s7442_s5 + $0x2d4] ss:$8 sps:$4 sm:$0xff]  }
 0x582   : > { %v2202_v52 = vpop.f32.mrb[31].mxu1  ;;  %v5716_v49 = vld [vmem:[%s7442_s5 + $0x2d0] ss:$8 sps:$4 sm:$0xff]  }
 0x583   : > { %2712 = vmatprep.mubr.bf16.mxu0 %v2205_v48  ;;  %v5721_v48 = vld [vmem:[%s7442_s5 + $0x3b4] ss:$8 sps:$4 sm:$0xff]   ;;  %v5724_v52 = vld [vmem:[%s7442_s5 + $0x2e4] ss:$8 sps:$4 sm:$0xff]  }
 0x584   : > { %2713 = vmatmul.mubr.bf16.vlgmr.msra.gmra.mrb[36].mxu0 %v2204_v51  ;;  %v5722_v51 = vld [vmem:[%s7442_s5 + $0x2e0] ss:$8 sps:$4 sm:$0xff]  }
 0x585   : > { %2963 = vmatpush1.bf16.msra.mxu0 %v5644_v50  ;;  %v5719_v50 = vld [vmem:[%s7442_s5 + $0x3b0] ss:$8 sps:$4 sm:$0xff]  }
 0x586   : > { %2964 = vmatprep.subr.bf16.mxu0 %v5649_v53  ;;  %v5725_v53 = vld [vmem:[%s7442_s5 + $0x3c0] ss:$8 sps:$4 sm:$0xff]  }
 0x587   : > { %v2277_v57 = vpop.f32.mrb[32].mxu1 }
 0x588   : > { %v2279_v59 = vpop.f32.mrb[33].mxu1  ;;  %v2284_v61 = vpack.c.bf16 %v2277_v57, %v2277_v57  ;;  %v5733_v57 = vld [vmem:[%s7442_s5 + $0x3d4] ss:$8 sps:$4 sm:$0xff]  }
 0x589   : > { %v2285_v8 = vpack.c.bf16 %v2279_v59, %v2279_v59  ;;  %v2281_v60 = vpop.f32.mrb[34].mxu1  ;;  %2965 = vmatpush1.bf16.msra.mxu0 %v5647_v55  ;;  %v5727_v55 = vld [vmem:[%s7442_s5 + $0x3c4] ss:$8 sps:$4 sm:$0xff]   ;;  %v5728_v59 = vld [vmem:[%s7442_s5 + $0x2f0] ss:$8 sps:$4 sm:$0xff]  }
 0x58a   : > { %v2282_v42 = vpop.f32.mrb[35].mxu1  ;;  %2966 = vmatprep.subr.bf16.mxu0 %v5652_v56  ;;  %v5730_v56 = vld [vmem:[%s7442_s5 + $0x2f4] ss:$8 sps:$4 sm:$0xff]   ;;  %v5736_v60 = vld [vmem:[%s7442_s5 + $0x3e4] ss:$8 sps:$4 sm:$0xff]  }
 0x58b   : > { %2511 = vmatprep.mubr.bf16.mxu1 %v2285_v8  ;;  %v5731_v8 = vld [vmem:[%s7442_s5 + $0x3d0] ss:$8 sps:$4 sm:$0xff]   ;;  %v5739_v42 = vld [vmem:[%s7442_s5 + $0x3f4] ss:$8 sps:$4 sm:$0xff]  }
 0x58c   : > { %2512 = vmatmul.mubr.bf16.vlgmr.msra.gmra.mrb[36].mxu1 %v2284_v61  ;;  %v5734_v61 = vld [vmem:[%s7442_s5 + $0x3e0] ss:$8 sps:$4 sm:$0xff]  }
 0x58d   : > { %2727 = vmatpush1.bf16.msra.mxu1 %v6721_v4  ;;  %2758 = vmatprep.mubr.bf16.mxu1 %v5918_v0 }
 0x58e   : > { %5020 = vmatprep.subr.msk.bf16.mxu1 %vm2156_vm5, %v6715_v1  ;;  %2967 = vmatpush1.bf16.msra.mxu0 %v5650_v54  ;;  %v5662_v1 = vld [vmem:[%s7442_s5 + $0x240] ss:$8 sps:$4 sm:$0xff]   ;;  %v5737_v54 = vld [vmem:[%s7442_s5 + $0x3f0] ss:$8 sps:$4 sm:$0xff]  }
 0x58f   : > { %2968 = vmatprep.subr.bf16.mxu0 %v5658_v58 }
 0x592   : > { %2969 = vmatpush1.bf16.msra.mxu0 %v5656_v45 }
 0x593   : > { %2970 = vmatprep.subr.bf16.mxu0 %v5664_v2 }
 0x594   : > { %4954 = vmatmul.mubr.msk.bf16.vlgmr.msra.gmra.mrb[40].mxu1 %vm2152_vm6, %v4952_v5 }
 0x595   : > { %3011 = vmatpush1.bf16.msra.mxu1 %v6721_v4  ;;  %3042 = vmatprep.mubr.bf16.mxu1 %v5918_v0  ;;  %v5653_v4 = vld [vmem:[%s7442_s5 + $0x300] ss:$8 sps:$4 sm:$0xff]  }
 0x596   : > { %3246 = vmatprep.subr.bf16.mxu1 %v5655_v7  ;;  %2971 = vmatpush1.bf16.msra.mxu0 %v5662_v1 }
 0x597   : > { %2972 = vmatprep.subr.bf16.mxu0 %v5670_v10 }
 0x59a   : > { %2973 = vmatpush1.bf16.msra.mxu0 %v5668_v11 }
 0x59b   : > { %2974 = vmatprep.subr.bf16.mxu0 %v5676_v12 }
 0x59c   : > { %5021 = vmatmul.mubr.msk.bf16.vlgmr.msra.gmra.mrb[44].mxu1 %vm2152_vm6, %v5019_v13 }
 0x59d   : > { %3247 = vmatpush1.bf16.msra.mxu1 %v5653_v4 }
 0x59e   : > { %3248 = vmatprep.subr.bf16.mxu1 %v5661_v14  ;;  %2975 = vmatpush1.bf16.msra.mxu0 %v5674_v62 }
 0x59f   : > { %2976 = vmatprep.subr.bf16.mxu0 %v5682_v63 }
 0x5a1   : > { %3249 = vmatpush1.bf16.msra.mxu1 %v5659_v15 }
 0x5a2   : > { %3250 = vmatprep.subr.bf16.mxu1 %v5667_v6  ;;  %2977 = vmatpush1.bf16.msra.mxu0 %v5680_v3 }
 0x5a3   : > { %2978 = vmatprep.subr.bf16.mxu0 %v5688_v16 }
 0x5a5   : > { %3251 = vmatpush1.bf16.msra.mxu1 %v5665_v17 }
 0x5a6   : > { %3252 = vmatprep.subr.bf16.mxu1 %v5673_v9  ;;  %2979 = vmatpush1.bf16.msra.mxu0 %v5686_v18 }
 0x5a7   : > { %2980 = vmatprep.subr.bf16.mxu0 %v5694_v19 }
 0x5a9   : > { %3253 = vmatpush1.bf16.msra.mxu1 %v5671_v20 }
 0x5aa   : > { %3254 = vmatprep.subr.bf16.mxu1 %v5679_v22  ;;  %2981 = vmatpush1.bf16.msra.mxu0 %v5692_v23 }
 0x5ab   : > { %2982 = vmatprep.subr.bf16.mxu0 %v5700_v25 }
 0x5ad   : > { %3255 = vmatpush1.bf16.msra.mxu1 %v5677_v26 }
 0x5ae   : > { %3256 = vmatprep.subr.bf16.mxu1 %v5685_v28  ;;  %2983 = vmatpush1.bf16.msra.mxu0 %v5698_v29  ;;  %v3289_v29 = vld [vmem:[%s7443_s6] sm:$0x3] }
 0x5af   : > { %2984 = vmatprep.subr.bf16.mxu0 %v5706_v37 }
 0x5b1   : > { %3257 = vmatpush1.bf16.msra.mxu1 %v5683_v30  ;;  %v3294_v30 = vrot.slane %v3289_v29, %v6660_v24 }
 0x5b2   : > { %3258 = vmatprep.subr.bf16.mxu1 %v5691_v31  ;;  %2985 = vmatpush1.bf16.msra.mxu0 %v5704_v39 }
 0x5b3   : > { %2986 = vmatprep.subr.bf16.mxu0 %v5712_v43 }
 0x5b5   : > { %3259 = vmatpush1.bf16.msra.mxu1 %v5689_v32  ;;  %v3298_v32 = vrot.slane %v3289_v29, %v6669_v27 }
 0x5b6   : > { %3260 = vmatprep.subr.bf16.mxu1 %v5697_v33  ;;  %2987 = vmatpush1.bf16.msra.mxu0 %v5710_v41 }
 0x5b7   : > { %2988 = vmatprep.subr.bf16.mxu0 %v5718_v47 }
 0x5b9   : > { %3261 = vmatpush1.bf16.msra.mxu1 %v5695_v34 }
 0x5ba   : > { %3262 = vmatprep.subr.bf16.mxu1 %v5703_v35  ;;  %2989 = vmatpush1.bf16.msra.mxu0 %v5716_v49  ;;  %v5919_v49 = vmov 65535  }
 0x5bb   : > { %2990 = vmatprep.subr.bf16.mxu0 %v5724_v52 }
 0x5bd   : > { %3263 = vmatpush1.bf16.msra.mxu1 %v5701_v36 }
 0x5be   : > { %3264 = vmatprep.subr.bf16.mxu1 %v5709_v38  ;;  %2991 = vmatpush1.bf16.msra.mxu0 %v5722_v51 }
 0x5bf   : > { %2992 = vmatprep.subr.bf16.mxu0 %v5730_v56 }
 0x5c1   : > { %3265 = vmatpush1.bf16.msra.mxu1 %v5707_v40 }
 0x5c2   : > { %3266 = vmatprep.subr.bf16.mxu1 %v5715_v46  ;;  %2993 = vmatpush1.bf16.msra.mxu0 %v5728_v59 }
 0x5c5   : > { %3267 = vmatpush1.bf16.msra.mxu1 %v5713_v44 }
 0x5c6   : > { %3268 = vmatprep.subr.bf16.mxu1 %v5721_v48 }
 0x5c9   : > { %3269 = vmatpush1.bf16.msra.mxu1 %v5719_v50  ;;  %v3323_v50 = vsel %vm3322_vm7, 4294967295, %v5919_v49  ;;  %v5775_v49 = vld [vmem:[%s7445_s8 + $0x118] sm:$0xff]  }
 0x5ca   : > { %3270 = vmatprep.subr.bf16.mxu1 %v5727_v55  ;;  %v3324_v56 = vsel %vm501_vm0, %v3323_v50, 0 }
 0x5cd   : > { %3271 = vmatpush1.bf16.msra.mxu1 %v5725_v53 }
 0x5ce   : > { %3272 = vmatprep.subr.bf16.mxu1 %v5733_v57 }
 0x5d1   : > { %3273 = vmatpush1.bf16.msra.mxu1 %v5731_v8 }
 0x5d2   : > { %3274 = vmatprep.subr.bf16.mxu1 %v5736_v60  ;;  %v5089_v60 = vld [vmem:[%s7444_s7 + $0x1] sm:$0x1] }
 0x5d5   : > { %3275 = vmatpush1.bf16.msra.mxu1 %v5734_v61  ;;  %v3317_v61 = vld [vmem:[%s7444_s7] sm:$0x1] }
 0x5d6   : > { %3276 = vmatprep.subr.bf16.mxu1 %v5739_v42  ;;  %v5740_v42 = vld [vmem:[%s7445_s8 + $0x60] sm:$0xff]  }
 0x5d9   : > { %3277 = vmatpush1.bf16.msra.mxu1 %v5737_v54  ;;  %v5752_v54 = vld [vmem:[%s7445_s8] sm:$0xff]  }
 0x657   : > { %v2714_v58 = vpop.f32.mrb[36].mxu0 }
 0x658   : > { %v2716_v45 = vpop.f32.mrb[37].mxu0 }
 0x659   : > { %v2718_v2 = vpop.f32.mrb[38].mxu0 }
 0x65a   : > { %v2719_v5 = vpop.f32.mrb[39].mxu0  ;;  %v5742_v2 = vld [vmem:[%s7445_s8 + $0x70] sm:$0xff]  }
 0x65b   : > { %v5754_v5 = vld [vmem:[%s7445_s8 + $0x10] sm:$0xff]  }
 0x65f   : > { %v2513_v7 = vpop.f32.mrb[36].mxu1 }
 0x660   : > { %v2715_v1 = vadd.f32 %v2714_v58, %v2513_v7  ;;  %v2515_v10 = vpop.f32.mrb[37].mxu1  ;;  %v5741_v58 = vld [vmem:[%s7445_s8 + $0x68] sm:$0xff]   ;;  %v5743_v7 = vld [vmem:[%s7445_s8 + $0x78] sm:$0xff]  }
 0x661   : > { %v2717_v11 = vadd.f32 %v2716_v45, %v2515_v10  ;;  %v2517_v12 = vpop.f32.mrb[38].mxu1  ;;  %v5753_v45 = vld [vmem:[%s7445_s8 + $0x8] sm:$0xff]   ;;  %v5744_v10 = vld [vmem:[%s7445_s8 + $0x80] sm:$0xff]  }
 0x662   : > { %v2518_v13 = vpop.f32.mrb[39].mxu1  ;;  %v5745_v12 = vld [vmem:[%s7445_s8 + $0x88] sm:$0xff]  }
 0x663   : > { %v5757_v13 = vld [vmem:[%s7445_s8 + $0x28] sm:$0xff]  }
 0x667   : > { %v2760_v4 = vpop.f32.mrb[40].mxu1 }
 0x668   : > { %v2762_v14 = vpop.f32.mrb[41].mxu1  ;;  %v2767_v15 = vpack.c.bf16 %v2760_v4, %v2760_v4  ;;  %v5746_v4 = vld [vmem:[%s7445_s8 + $0x90] sm:$0xff]  }
 0x669   : > { %v2768_v62 = vpack.c.bf16 %v2762_v14, %v2762_v14  ;;  %v2764_v63 = vpop.f32.mrb[42].mxu1  ;;  %v5758_v14 = vld [vmem:[%s7445_s8 + $0x30] sm:$0xff]  }
 0x66a   : > { %v2765_v6 = vpop.f32.mrb[43].mxu1  ;;  %v5759_v63 = vld [vmem:[%s7445_s8 + $0x38] sm:$0xff]  }
 0x66b   : > { %2994 = vmatprep.mubr.bf16.mxu0 %v2768_v62  ;;  %v5747_v62 = vld [vmem:[%s7445_s8 + $0x98] sm:$0xff]   ;;  %v5760_v6 = vld [vmem:[%s7445_s8 + $0x40] sm:$0xff]  }
 0x66c   : > { %2995 = vmatmul.mubr.bf16.vlgmr.msra.gmra.mrb[40].mxu0 %v2767_v15  ;;  %v5748_v15 = vld [vmem:[%s7445_s8 + $0xa0] sm:$0xff]  }
 0x66d   : > { %3435 = vmatprep.mubr.bf16.mxu0 %v5918_v0 }
 0x66f   : > { %v3044_v3 = vpop.f32.mrb[44].mxu1 }
 0x670   : > { %v3046_v16 = vpop.f32.mrb[45].mxu1  ;;  %v3051_v18 = vpack.c.bf16 %v3044_v3, %v3044_v3  ;;  %v5749_v3 = vld [vmem:[%s7445_s8 + $0xa8] sm:$0xff]  }
 0x671   : > { %v3052_v17 = vpack.c.bf16 %v3046_v16, %v3046_v16  ;;  %v3048_v9 = vpop.f32.mrb[46].mxu1  ;;  %v5761_v16 = vld [vmem:[%s7445_s8 + $0x48] sm:$0xff]  }
 0x672   : > { %v3049_v19 = vpop.f32.mrb[47].mxu1  ;;  %v5751_v9 = vld [vmem:[%s7445_s8 + $0xb8] sm:$0xff]  }
 0x673   : > { %3278 = vmatprep.mubr.bf16.mxu1 %v3052_v17  ;;  %v5750_v17 = vld [vmem:[%s7445_s8 + $0xb0] sm:$0xff]   ;;  %v5763_v19 = vld [vmem:[%s7445_s8 + $0x58] sm:$0xff]  }
 0x674   : > { %3279 = vmatmul.mubr.bf16.vlgmr.msra.gmra.mrb[48].mxu1 %v3051_v18  ;;  %v5762_v18 = vld [vmem:[%s7445_s8 + $0x50] sm:$0xff]  }
 0x675   : > { %3363 = vmatprep.mubr.bf16.mxu1 %v5918_v0 }
 0x73f   : > { %v2996_v20 = vpop.f32.mrb[40].mxu0 }
 0x740   : > { %v3003_v22 = vadd.f32 %v2996_v20, %v2715_v1  ;;  %v2998_v23 = vpop.f32.mrb[41].mxu0  ;;  %v5755_v1 = vld [vmem:[%s7445_s8 + $0x18] sm:$0xff]  }
 0x741   : > { %v3004_v25 = vadd.f32 %v2998_v23, %v2717_v11  ;;  %v3000_v26 = vpop.f32.mrb[42].mxu0  ;;  %v5756_v11 = vld [vmem:[%s7445_s8 + $0x20] sm:$0xff]  }
 0x742   : > { %v3001_v28 = vpop.f32.mrb[43].mxu0 }
 0x747   : > { %v3280_v31 = vpop.f32.mrb[48].mxu1 }
 0x748   : > { %v3287_v33 = vadd.f32 %v3280_v31, %v3003_v22  ;;  %v3282_v34 = vpop.f32.mrb[49].mxu1 }
 0x749   : > { %v3288_v35 = vadd.f32 %v3282_v34, %v3004_v25  ;;  %v3284_v36 = vpop.f32.mrb[50].mxu1 }
 0x74a   : > { %v3301_v37 = vadd.f32 %v3294_v30, %v3287_v33  ;;  %v3285_v38 = vpop.f32.mrb[51].mxu1  ;;  %v5765_v36 = vld [vmem:[%s7445_s8 + $0xc8] sm:$0xff]  }
 0x74b   : > { %v3302_v39 = vadd.f32 %v3298_v32, %v3288_v35  ;;  %v5764_v35 = vld [vmem:[%s7445_s8 + $0xc0] sm:$0xff]   ;;  %v5766_v38 = vld [vmem:[%s7445_s8 + $0xd0] sm:$0xff]  }
 0x74c   : > { %v3305_v40 = vmin.f32 %v3301_v37, 0.0  ;;  %vm3303_vm8 = vcmp.gt.f32.partialorder %v3301_v37, 0.0 }
 0x74d   : > { %v3306_v41 = vmin.f32 %v3302_v39, 0.0  ;;  %vm3304_vm9 = vcmp.gt.f32.partialorder %v3302_v39, 0.0 }
 0x74e   : > { %v3307_v43 = vmul.f32 1.442695, %v3305_v40  ;;  %v5768_v40 = vld [vmem:[%s7445_s8 + $0xe0] sm:$0xff]  }
 0x74f   : > { %v3309_v44 = vmul.f32 1.442695, %v3306_v41  ;;  %v5769_v41 = vld [vmem:[%s7445_s8 + $0xe8] sm:$0xff]  }
 0x750   : > { %5836 = vpow2.f32 %v3307_v43  ;;  %v5770_v43 = vld [vmem:[%s7445_s8 + $0xf0] sm:$0xff]  }
 0x751   : > { %5838 = vpow2.f32 %v3309_v44  ;;  %v5771_v44 = vld [vmem:[%s7445_s8 + $0xf8] sm:$0xff]  }
 0x75a   : > { %v5837_v46 = vpop.eup %5836 }
 0x75b   : > { %v5839_v47 = vpop.eup %5838  ;;  %v5086_v48 = vadd.f32 -1.0, %v5837_v46  ;;  %v5772_v46 = vld [vmem:[%s7445_s8 + $0x100] sm:$0xff]  }
 0x75c   : > { %v5087_v51 = vadd.f32 -1.0, %v5839_v47  ;;  %v5773_v47 = vld [vmem:[%s7445_s8 + $0x108] sm:$0xff]  }
 0x75d   : > { %v3313_v52 = vsel %vm3303_vm8, %v3301_v37, %v5086_v48  ;;  %v5141_v37 = vld [vmem:[%s7444_s7 + $0x2] sm:$0x1]  ;;  %v5774_v48 = vld [vmem:[%s7445_s8 + $0x110] sm:$0xff]  }
 0x75e   : > { %v3315_v53 = vpack.c.bf16 %v3313_v52, %v3313_v52  ;;  %v3314_v55 = vsel %vm3304_vm9, %v3302_v39, %v5087_v51  ;;  %v5767_v39 = vld [vmem:[%s7445_s8 + $0xd8] sm:$0xff]  }
 0x75f   : > { %v3316_v57 = vpack.c.bf16 %v3314_v55, %v3314_v55 }
 0x760   : > { %v7061_v8 = vand.u32 %v3324_v56, %v3315_v53 }
 0x761   : > { %v7059_v59 = vand.u32 %v3324_v56, %v3316_v57 }
 0x763   : > { %3331 = vmatprep.subr.bf16.mxu1 %v7059_v59  ;;  %3403 = vmatprep.subr.bf16.mxu0 %v7059_v59 }
 0x764   : > { %3332 = vmatpush1.bf16.msra.mxu1 %v7061_v8  ;;  %3404 = vmatpush1.bf16.msra.mxu0 %v7061_v8 }
 0x765   : > { %3547 = vmatprep.subr.bf16.mxu1 %v5918_v0  ;;  %3662 = vmatprep.subr.bf16.mxu0 %v5918_v0 }
 0x767   : > { %5090 = vmatmul.mubr.msk.bf16.vlgmr.msra.gmra.mrb[44].mxu0 %vm3318_vm10, %v5089_v60  ;;  %5088 = vmatmul.mubr.msk.bf16.vlgmr.msra.gmra.mrb[52].mxu1 %vm3318_vm10, %v3317_v61 }
 0x768   : > { %3548 = vmatpush1.bf16.msra.mxu1 %v5740_v42  ;;  %3663 = vmatpush1.bf16.msra.mxu0 %v5752_v54 }
 0x769   : > { %3549 = vmatprep.subr.bf16.mxu1 %v5918_v0  ;;  %3664 = vmatprep.subr.bf16.mxu0 %v5918_v0 }
 0x76c   : > { %3550 = vmatpush1.bf16.msra.mxu1 %v5741_v58  ;;  %3665 = vmatpush1.bf16.msra.mxu0 %v5753_v45 }
 0x76d   : > { %3551 = vmatprep.subr.bf16.mxu1 %v5918_v0  ;;  %3666 = vmatprep.subr.bf16.mxu0 %v5918_v0 }
 0x770   : > { %3552 = vmatpush1.bf16.msra.mxu1 %v5742_v2  ;;  %3667 = vmatpush1.bf16.msra.mxu0 %v5754_v5  ;;  %v5778_v2 = vld [vmem:[%s7447_s10 + $0x4] ss:$16 sps:$4 sm:$0xff]   ;;  %v5776_v5 = vld [vmem:[%s7447_s10] ss:$16 sps:$4 sm:$0xff]  }
 0x771   : > { %3553 = vmatprep.subr.bf16.mxu1 %v5918_v0  ;;  %3668 = vmatprep.subr.bf16.mxu0 %v5918_v0 }
 0x774   : > { %3554 = vmatpush1.bf16.msra.mxu1 %v5743_v7  ;;  %3669 = vmatpush1.bf16.msra.mxu0 %v5755_v1  ;;  %v5781_v7 = vld [vmem:[%s7447_s10 + $0x24] ss:$16 sps:$4 sm:$0xff]   ;;  %v5779_v1 = vld [vmem:[%s7447_s10 + $0x20] ss:$16 sps:$4 sm:$0xff]  }
 0x775   : > { %3555 = vmatprep.subr.bf16.mxu1 %v5918_v0  ;;  %3670 = vmatprep.subr.bf16.mxu0 %v5918_v0 }
 0x778   : > { %3556 = vmatpush1.bf16.msra.mxu1 %v5744_v10  ;;  %3671 = vmatpush1.bf16.msra.mxu0 %v5756_v11  ;;  %v5784_v10 = vld [vmem:[%s7447_s10 + $0x44] ss:$16 sps:$4 sm:$0xff]   ;;  %v5782_v11 = vld [vmem:[%s7447_s10 + $0x40] ss:$16 sps:$4 sm:$0xff]  }
 0x779   : > { %3557 = vmatprep.subr.bf16.mxu1 %v5918_v0  ;;  %3672 = vmatprep.subr.bf16.mxu0 %v5918_v0 }
 0x77c   : > { %3558 = vmatpush1.bf16.msra.mxu1 %v5745_v12  ;;  %3673 = vmatpush1.bf16.msra.mxu0 %v5757_v13  ;;  %v5787_v12 = vld [vmem:[%s7447_s10 + $0x64] ss:$16 sps:$4 sm:$0xff]   ;;  %v5785_v13 = vld [vmem:[%s7447_s10 + $0x60] ss:$16 sps:$4 sm:$0xff]  }
 0x77d   : > { %3559 = vmatprep.subr.bf16.mxu1 %v5918_v0  ;;  %3674 = vmatprep.subr.bf16.mxu0 %v5918_v0 }
 0x780   : > { %3560 = vmatpush1.bf16.msra.mxu1 %v5746_v4  ;;  %3675 = vmatpush1.bf16.msra.mxu0 %v5758_v14  ;;  %v5790_v4 = vld [vmem:[%s7447_s10 + $0xc] ss:$16 sps:$4 sm:$0xff]  }
 0x781   : > { %3561 = vmatprep.subr.bf16.mxu1 %v5918_v0  ;;  %3676 = vmatprep.subr.bf16.mxu0 %v5918_v0 }
 0x784   : > { %3562 = vmatpush1.bf16.msra.mxu1 %v5747_v62  ;;  %3677 = vmatpush1.bf16.msra.mxu0 %v5759_v63  ;;  %v3891_v62 = vld [vmem:[%s7446_s9] sm:$0x1] }
 0x785   : > { %3563 = vmatprep.subr.bf16.mxu1 %v5918_v0  ;;  %3678 = vmatprep.subr.bf16.mxu0 %v5918_v0 }
 0x788   : > { %3564 = vmatpush1.bf16.msra.mxu1 %v5748_v15  ;;  %3679 = vmatpush1.bf16.msra.mxu0 %v5760_v6 }
 0x789   : > { %3565 = vmatprep.subr.bf16.mxu1 %v5918_v0  ;;  %3680 = vmatprep.subr.bf16.mxu0 %v5918_v0 }
 0x78c   : > { %3566 = vmatpush1.bf16.msra.mxu1 %v5749_v3  ;;  %3681 = vmatpush1.bf16.msra.mxu0 %v5761_v16 }
 0x78d   : > { %3567 = vmatprep.subr.bf16.mxu1 %v5918_v0  ;;  %3682 = vmatprep.subr.bf16.mxu0 %v5918_v0 }
 0x790   : > { %3568 = vmatpush1.bf16.msra.mxu1 %v5750_v17  ;;  %3683 = vmatpush1.bf16.msra.mxu0 %v5762_v18 }
 0x791   : > { %3569 = vmatprep.subr.bf16.mxu1 %v5918_v0  ;;  %3684 = vmatprep.subr.bf16.mxu0 %v5918_v0 }
 0x794   : > { %3570 = vmatpush1.bf16.msra.mxu1 %v5751_v9  ;;  %3685 = vmatpush1.bf16.msra.mxu0 %v5763_v19 }
 0x795   : > { %3707 = vmatprep.subr.bf16.mxu1 %v7059_v59  ;;  %3850 = vmatprep.subr.bf16.mxu0 %v5918_v0 }
 0x83a   : > { %v3437_v20 = vpop.f32.mrb[44].mxu0  ;;  %v3365_v22 = vpop.f32.mrb[52].mxu1 }
 0x83b   : > { %v3439_v23 = vpop.f32.mrb[45].mxu0  ;;  %v3372_v25 = vpack.c.bf16 %v3365_v22, %v3365_v22  ;;  %v3367_v26 = vpop.f32.mrb[53].mxu1  ;;  %v3444_v32 = vpack.c.bf16 %v3437_v20, %v3437_v20  ;;  %v5788_v22 = vld [vmem:[%s7447_s10 + $0x8] ss:$16 sps:$4 sm:$0xff]  }
 0x83c   : > { %v3445_v28 = vpack.c.bf16 %v3439_v23, %v3439_v23  ;;  %v3373_v29 = vpack.c.bf16 %v3367_v26, %v3367_v26  ;;  %v3441_v30 = vpop.f32.mrb[46].mxu0  ;;  %v3369_v31 = vpop.f32.mrb[54].mxu1  ;;  %v5791_v26 = vld [vmem:[%s7447_s10 + $0x28] ss:$16 sps:$4 sm:$0xff]  }
 0x83d   : > { %v3442_v33 = vpop.f32.mrb[47].mxu0  ;;  %v3370_v34 = vpop.f32.mrb[55].mxu1  ;;  %v5799_v30 = vld [vmem:[%s7447_s10 + $0x6c] ss:$16 sps:$4 sm:$0xff]   ;;  %v5800_v31 = vld [vmem:[%s7449_s12 + $0x40] sm:$0xff]  }
 0x83e   : > { %5127 = vmatprep.mubr.msk.bf16.mxu1 %vm3543_vm11, %v3445_v28  ;;  %5140 = vmatprep.mubr.msk.bf16.mxu0 %vm3543_vm11, %v3373_v29  ;;  %v5796_v28 = vld [vmem:[%s7447_s10 + $0x4c] ss:$16 sps:$4 sm:$0xff]   ;;  %v5794_v29 = vld [vmem:[%s7447_s10 + $0x48] ss:$16 sps:$4 sm:$0xff]  }
 0x83f   : > { %3580 = vmatmul.mubr.bf16.vlgmr.msra.gmra.mrb[56].mxu1 %v3444_v32  ;;  %3695 = vmatmul.mubr.bf16.vlgmr.msra.gmra.mrb[48].mxu0 %v3372_v25  ;;  %v5793_v25 = vld [vmem:[%s7447_s10 + $0x2c] ss:$16 sps:$4 sm:$0xff]   ;;  %v5801_v32 = vld [vmem:[%s7449_s12] sm:$0xff]  }
 0x840   : > { %3708 = vmatpush1.bf16.msra.mxu1 %v7061_v8  ;;  %3739 = vmatprep.mubr.bf16.mxu1 %v5918_v0  ;;  %v5802_v33 = vld [vmem:[%s7449_s12 + $0x48] sm:$0xff]  }
 0x841   : > { %3851 = vmatpush1.bf16.msra.mxu0 %v5764_v35  ;;  %4021 = vmatprep.subr.bf16.mxu1 %v5778_v2  ;;  %v5803_v34 = vld [vmem:[%s7449_s12 + $0x8] sm:$0xff]   ;;  %v5804_v35 = vld [vmem:[%s7449_s12 + $0x50] sm:$0xff]   ;;  %v3916_v2 = vld [vmem:[%s7448_s11] sm:$0xf] }
 0x842   : > { %3852 = vmatprep.subr.bf16.mxu0 %v5918_v0 }
 0x845   : > { %3853 = vmatpush1.bf16.msra.mxu0 %v5765_v36  ;;  %v5805_v36 = vld [vmem:[%s7449_s12 + $0x10] sm:$0xff]  }
 0x846   : > { %3854 = vmatprep.subr.bf16.mxu0 %v5918_v0 }
 0x847   : > { %5142 = vmatmul.mubr.msk.bf16.vlgmr.msra.gmra.mrb[60].mxu1 %vm3318_vm10, %v5141_v37  ;;  %v5806_v37 = vld [vmem:[%s7449_s12 + $0x58] sm:$0xff]  }
 0x848   : > { %4053 = vmatprep.mubr.bf16.mxu1 %v5918_v0  ;;  %4022 = vmatpush1.bf16.msra.mxu1 %v5776_v5  ;;  %v4001_v5 = vrot.slane %v3916_v2, %v6660_v24 }
 0x849   : > { %3855 = vmatpush1.bf16.msra.mxu0 %v5766_v38  ;;  %4023 = vmatprep.subr.bf16.mxu1 %v5781_v7  ;;  %v5807_v38 = vld [vmem:[%s7449_s12 + $0x18] sm:$0xff]   ;;  %v4005_v7 = vrot.slane %v3916_v2, %v6669_v27 }
 0x84a   : > { %3856 = vmatprep.subr.bf16.mxu0 %v5918_v0 }
 0x84c   : > { %4024 = vmatpush1.bf16.msra.mxu1 %v5779_v1 }
 0x84d   : > { %3857 = vmatpush1.bf16.msra.mxu0 %v5767_v39  ;;  %4025 = vmatprep.subr.bf16.mxu1 %v5784_v10  ;;  %v5808_v39 = vld [vmem:[%s7449_s12 + $0xc0] sm:$0xff]  }
 0x84e   : > { %3858 = vmatprep.subr.bf16.mxu0 %v5918_v0 }
 0x850   : > { %4026 = vmatpush1.bf16.msra.mxu1 %v5782_v11 }
 0x851   : > { %3859 = vmatpush1.bf16.msra.mxu0 %v5768_v40  ;;  %4027 = vmatprep.subr.bf16.mxu1 %v5787_v12  ;;  %v5809_v40 = vld [vmem:[%s7449_s12 + $0x60] sm:$0xff]  }
 0x852   : > { %3860 = vmatprep.subr.bf16.mxu0 %v5918_v0 }
 0x854   : > { %4028 = vmatpush1.bf16.msra.mxu1 %v5785_v13 }
 0x855   : > { %3861 = vmatpush1.bf16.msra.mxu0 %v5769_v41  ;;  %4062 = vmatprep.subr.bf16.mxu1 %v5790_v4  ;;  %v5810_v41 = vld [vmem:[%s7449_s12 + $0x80] sm:$0xff]  }
 0x856   : > { %3862 = vmatprep.subr.bf16.mxu0 %v5918_v0 }
 0x859   : > { %3863 = vmatpush1.bf16.msra.mxu0 %v5770_v43  ;;  %v5811_v43 = vld [vmem:[%s7449_s12 + $0x20] sm:$0xff]  }
 0x85a   : > { %3864 = vmatprep.subr.bf16.mxu0 %v5918_v0 }
 0x85d   : > { %3865 = vmatpush1.bf16.msra.mxu0 %v5771_v44  ;;  %v5812_v44 = vld [vmem:[%s7449_s12 + $0xc8] sm:$0xff]  }
 0x85e   : > { %3866 = vmatprep.subr.bf16.mxu0 %v5918_v0 }
 0x861   : > { %3867 = vmatpush1.bf16.msra.mxu0 %v5772_v46  ;;  %v5813_v46 = vld [vmem:[%s7449_s12 + $0x68] sm:$0xff]  }
 0x862   : > { %3868 = vmatprep.subr.bf16.mxu0 %v5918_v0 }
 0x865   : > { %3869 = vmatpush1.bf16.msra.mxu0 %v5773_v47  ;;  %v5814_v47 = vld [vmem:[%s7449_s12 + $0x88] sm:$0xff]  }
 0x866   : > { %3870 = vmatprep.subr.bf16.mxu0 %v5918_v0 }
 0x869   : > { %3871 = vmatpush1.bf16.msra.mxu0 %v5774_v48  ;;  %v5815_v48 = vld [vmem:[%s7449_s12 + $0x28] sm:$0xff]  }
 0x86a   : > { %3872 = vmatprep.subr.bf16.mxu0 %v5918_v0 }
 0x86d   : > { %3873 = vmatpush1.bf16.msra.mxu0 %v5775_v49  ;;  %v5816_v49 = vld [vmem:[%s7449_s12 + $0xd0] sm:$0xff]  }
 0x86e   : > { %5260 = vmatprep.subr.bf16.mxu0 %v5808_v39 }
 0x912   : > { %v3581_v50 = vpop.f32.mrb[56].mxu1  ;;  %v3696_v51 = vpop.f32.mrb[48].mxu0 }
 0x913   : > { %v3583_v52 = vpop.f32.mrb[57].mxu1  ;;  %v3697_v53 = vadd.f32 %v3696_v51, %v3581_v50  ;;  %v3698_v55 = vpop.f32.mrb[49].mxu0  ;;  %v5817_v50 = vld [vmem:[%s7449_s12 + $0x70] sm:$0xff]  }
 0x914   : > { %v3584_v56 = vpop.f32.mrb[58].mxu1  ;;  %v3699_v57 = vpop.f32.mrb[50].mxu0  ;;  %v5818_v51 = vld [vmem:[%s7449_s12 + $0x90] sm:$0xff]   ;;  %v5821_v55 = vld [vmem:[%s7449_s12 + $0x78] sm:$0xff]  }
 0x915   : > { %v3585_v59 = vpop.f32.mrb[59].mxu1  ;;  %v3700_v8 = vpop.f32.mrb[51].mxu0  ;;  %v5819_v52 = vld [vmem:[%s7449_s12 + $0x30] sm:$0xff]   ;;  %v5822_v56 = vld [vmem:[%s7449_s12 + $0x98] sm:$0xff]  }
 0x916   : > { %v5823_v57 = vld [vmem:[%s7449_s12 + $0x38] sm:$0xff]   ;;  %v5824_v59 = vld [vmem:[%s7449_s12 + $0xe0] sm:$0xff]  }
 0x917   : > { %v5825_v8 = vld [vmem:[%s7449_s12 + $0xa0] sm:$0xff]  }
 0x91a   : > { %v3741_v60 = vpop.f32.mrb[60].mxu1 }
 0x91b   : > { %v3743_v61 = vpop.f32.mrb[61].mxu1  ;;  %v3748_v58 = vpack.c.bf16 %v3741_v60, %v3741_v60  ;;  %v5826_v60 = vld [vmem:[%s7449_s12 + $0xe8] sm:$0xff]  }
 0x91c   : > { %v3749_v42 = vpack.c.bf16 %v3743_v61, %v3743_v61  ;;  %v3745_v54 = vpop.f32.mrb[62].mxu1  ;;  %v5827_v61 = vld [vmem:[%s7449_s12 + $0xa8] sm:$0xff]  }
 0x91d   : > { %v3746_v45 = vpop.f32.mrb[63].mxu1  ;;  %v5829_v54 = vld [vmem:[%s7449_s12 + $0xb0] sm:$0xff]  }
 0x91e   : > { %5179 = vmatprep.mubr.msk.bf16.mxu0 %vm3543_vm11, %v3749_v42  ;;  %v5828_v42 = vld [vmem:[%s7449_s12 + $0xf0] sm:$0xff]   ;;  %v5831_v45 = vld [vmem:[%s7449_s12 + $0xb8] sm:$0xff]  }
 0x91f   : > { %3883 = vmatmul.mubr.bf16.vlgmr.msra.gmra.mrb[52].mxu0 %v3748_v58  ;;  %v5830_v58 = vld [vmem:[%s7449_s12 + $0xf8] sm:$0xff]  }
 0x920   : > { %5261 = vmatpush3.bf16.msra.mxu0 %v5810_v41 }
 0x921   : > { %5262 = vmatprep.subr.bf16.mxu0 %v5812_v44 }
 0x924   : > { %5263 = vmatpush3.bf16.msra.mxu0 %v5814_v47 }
 0x925   : > { %5264 = vmatprep.subr.bf16.mxu0 %v5816_v49  ;;  %v4195_v49 = vld [vmem:[%s7450_s13] sm:$0x1] }
 0x928   : > { %5265 = vmatpush3.bf16.msra.mxu0 %v5818_v51 }
 0x9f2   : > { %v3884_v14 = vpop.f32.mrb[52].mxu0 }
 0x9f3   : > { %v3890_v63 = vadd.f32 %v3884_v14, %v3697_v53  ;;  %v3886_v15 = vpop.f32.mrb[53].mxu0  ;;  %v5820_v53 = vld [vmem:[%s7449_s12 + $0xd8] sm:$0xff]  }
 0x9f4   : > { %v3887_v6 = vpop.f32.mrb[54].mxu0  ;;  %5266 = vmatprep.subr.bf16.mxu0 %v5820_v53 }
 0x9f5   : > { %v3892_v3 = vadd.f32 %v3891_v62, %v3890_v63  ;;  %v3888_v16 = vpop.f32.mrb[55].mxu0  ;;  %5267 = vmatpush3.bf16.msra.mxu0 %v5822_v56  ;;  %v4008_v6 = vsub.s32 2, %v6651_v21 }
 0x9f6   : > { %5268 = vmatprep.subr.bf16.mxu0 %v5824_v59 }
 0x9f7   : > { %v3894_v17 = vmin.f32 %v3892_v3, 0.0  ;;  %vm3893_vm12 = vcmp.gt.f32.partialorder %v3892_v3, 0.0  ;;  %v4009_v16 = vrot.slane %v3916_v2, %v4008_v6 }
 0x9f9   : > { %v3895_v9 = vmul.f32 1.442695, %v3894_v17  ;;  %5269 = vmatpush3.bf16.msra.mxu0 %v5825_v8 }
 0x9fa   : > { %5270 = vmatprep.subr.bf16.mxu0 %v5826_v60 }
 0x9fb   : > { %5840 = vpow2.f32 %v3895_v9 }
 0x9fd   : > { %5271 = vmatpush3.bf16.msra.mxu0 %v5827_v61 }
 0x9fe   : > { %5272 = vmatprep.subr.bf16.mxu0 %v5828_v42 }
 0xa01   : > { %5273 = vmatpush3.bf16.msra.mxu0 %v5829_v54 }
 0xa02   : > { %5274 = vmatprep.subr.bf16.mxu0 %v5830_v58 }
 0xa05   : > { %v5841_v18 = vpop.eup %5840  ;;  %5275 = vmatpush3.bf16.msra.mxu0 %v5831_v45 }
 0xa06   : > { %v5180_v19 = vadd.f32 -1.0, %v5841_v18 }
 0xa08   : > { %v3898_v20 = vsel %vm3893_vm12, %v3892_v3, %v5180_v19  ;;  %v4012_v3 = vsub.s32 3, %v6651_v21 }
 0xa09   : > { %v3899_v23 = vpack.c.bf16 %v3898_v20, %v3898_v20 }
 0xa0a   : > { %v4013_v24 = vrot.slane %v3916_v2, %v4012_v3 }
 0xa0b   : > { %5197 = vmatmul.mubr.msk.bf16.vlgmr.msra.gmra.mrb[64].mxu1 %vm3543_vm11, %v3899_v23 }
 0xa0c   : > { %4063 = vmatpush1.bf16.msra.mxu1 %v5788_v22  ;;  %4094 = vmatprep.mubr.bf16.mxu1 %v5918_v0  ;;  %v5797_v0 = vld [vmem:[%s7447_s10 + $0x68] ss:$16 sps:$4 sm:$0xff]  }
 0xa0d   : > { %4064 = vmatprep.subr.bf16.mxu1 %v5793_v25 }
 0xa10   : > { %4065 = vmatpush1.bf16.msra.mxu1 %v5791_v26 }
 0xa11   : > { %4066 = vmatprep.subr.bf16.mxu1 %v5796_v28 }
 0xa14   : > { %4067 = vmatpush1.bf16.msra.mxu1 %v5794_v29 }
 0xa15   : > { %4068 = vmatprep.subr.bf16.mxu1 %v5799_v30 }
 0xa18   : > { %4069 = vmatpush1.bf16.msra.mxu1 %v5797_v0 }
 0xa19   : > { %5238 = vmatprep.subr.bf16.mxu1 %v5800_v31 }
 0xa1b   : > { %5198 = vmatmul.mubr.msk.bf16.vlgmr.msra.gmra.mrb[68].mxu1 %vm3543_vm11, %v3899_v23 }
 0xa1c   : > { %5239 = vmatpush3.bf16.msra.mxu1 %v5801_v32 }
 0xa1d   : > { %5240 = vmatprep.subr.bf16.mxu1 %v5802_v33 }
 0xa20   : > { %5241 = vmatpush3.bf16.msra.mxu1 %v5803_v34 }
 0xa21   : > { %5242 = vmatprep.subr.bf16.mxu1 %v5804_v35 }
 0xa24   : > { %5243 = vmatpush3.bf16.msra.mxu1 %v5805_v36 }
 0xa25   : > { %5244 = vmatprep.subr.bf16.mxu1 %v5806_v37 }
 0xa28   : > { %5245 = vmatpush3.bf16.msra.mxu1 %v5807_v38 }
 0xa29   : > { %5246 = vmatprep.subr.bf16.mxu1 %v5809_v40 }
 0xa2c   : > { %5247 = vmatpush3.bf16.msra.mxu1 %v5811_v43 }
 0xa2d   : > { %5248 = vmatprep.subr.bf16.mxu1 %v5813_v46 }
 0xa30   : > { %5249 = vmatpush3.bf16.msra.mxu1 %v5815_v48 }
 0xa31   : > { %5250 = vmatprep.subr.bf16.mxu1 %v5817_v50 }
 0xa34   : > { %5251 = vmatpush3.bf16.msra.mxu1 %v5819_v52 }
 0xa35   : > { %5252 = vmatprep.subr.bf16.mxu1 %v5821_v55 }
 0xa38   : > { %5253 = vmatpush3.bf16.msra.mxu1 %v5823_v57 }
 0xade   : > { %v4055_v1 = vpop.f32.mrb[64].mxu1 }
 0xadf   : > { %v4056_v10 = vadd.f32 %v4055_v1, %v4001_v5  ;;  %v4057_v11 = vpop.f32.mrb[65].mxu1 }
 0xae0   : > { %v4058_v12 = vadd.f32 %v4057_v11, %v4005_v7  ;;  %v4059_v13 = vpop.f32.mrb[66].mxu1 }
 0xae1   : > { %v4107_v4 = vmin.f32 %v4056_v10, 0.0  ;;  %v4060_v14 = vpop.f32.mrb[67].mxu1  ;;  %vm4103_vm13 = vcmp.gt.f32.partialorder %v4056_v10, 0.0 }
 0xae2   : > { %v4108_v62 = vmin.f32 %v4058_v12, 0.0  ;;  %vm4104_vm14 = vcmp.gt.f32.partialorder %v4058_v12, 0.0 }
 0xae3   : > { %v4111_v63 = vmul.f32 1.442695, %v4107_v4 }
 0xae4   : > { %v4113_v15 = vmul.f32 1.442695, %v4108_v62 }
 0xae5   : > { %5842 = vpow2.f32 %v4111_v63 }
 0xae6   : > { %5844 = vpow2.f32 %v4113_v15 }
 0xaee   : > { %v4096_v17 = vpop.f32.mrb[68].mxu1 }
 0xaef   : > { %v5843_v27 = vpop.eup %5842  ;;  %v4097_v9 = vadd.f32 %v4096_v17, %v4009_v16  ;;  %v4098_v18 = vpop.f32.mrb[69].mxu1 }
 0xaf0   : > { %v5845_v19 = vpop.eup %5844  ;;  %v5199_v20 = vadd.f32 -1.0, %v5843_v27  ;;  %v4099_v22 = vadd.f32 %v4098_v18, %v4013_v24  ;;  %v4100_v23 = vpop.f32.mrb[70].mxu1 }
 0xaf1   : > { %v4109_v25 = vmin.f32 %v4097_v9, 0.0  ;;  %v4101_v26 = vpop.f32.mrb[71].mxu1  ;;  %v5200_v28 = vadd.f32 -1.0, %v5845_v19  ;;  %vm4105_vm15 = vcmp.gt.f32.partialorder %v4097_v9, 0.0 }
 0xaf2   : > { %v4123_v29 = vsel %vm4103_vm13, %v4056_v10, %v5199_v20  ;;  %v4110_v30 = vmin.f32 %v4099_v22, 0.0  ;;  %vm4106_vm0 = vcmp.gt.f32.partialorder %v4099_v22, 0.0 }
 0xaf3   : > { %v4115_v0 = vmul.f32 1.442695, %v4109_v25  ;;  %v4124_v31 = vsel %vm4104_vm14, %v4058_v12, %v5200_v28  ;;  %v4127_v33 = vpack.c.bf16 %v4123_v29, %v4123_v29 }
 0xaf4   : > { %v4117_v21 = vmul.f32 1.442695, %v4110_v30  ;;  %v4128_v32 = vpack.c.bf16 %v4124_v31, %v4124_v31 }
 0xaf5   : > { %5846 = vpow2.f32 %v4115_v0 }
 0xaf6   : > { %5848 = vpow2.f32 %v4117_v21  ;;  %4420 = vmatprep.mubr.bf16.mxu1 %v4128_v32 }
 0xaf7   : > { %4421 = vmatmul.mubr.bf16.vlgmr.msra.gmra.mrb[72].mxu1 %v4127_v33 }
 0xaff   : > { %v5847_v34 = vpop.eup %5846 }
 0xb00   : > { %v5849_v35 = vpop.eup %5848  ;;  %v5201_v36 = vadd.f32 -1.0, %v5847_v34 }
 0xb01   : > { %v5202_v37 = vadd.f32 -1.0, %v5849_v35 }
 0xb02   : > { %v4125_v38 = vsel %vm4105_vm15, %v4097_v9, %v5201_v36 }
 0xb03   : > { %v4126_v39 = vsel %vm4106_vm0, %v4099_v22, %v5202_v37  ;;  %v4129_v41 = vpack.c.bf16 %v4125_v38, %v4125_v38 }
 0xb04   : > { %v4130_v40 = vpack.c.bf16 %v4126_v39, %v4126_v39 }
 0xb06   : > { %4460 = vmatprep.mubr.bf16.mxu0 %v4130_v40 }
 0xb07   : > { %4461 = vmatmul.mubr.bf16.vlgmr.msra.gmra.mrb[56].mxu0 %v4129_v41 }
 0xbca   : > { %v5254_v43 = vpop.f32.mrb[72].mxu1 }
 0xbcb   : > { %v5255_v44 = vpop.f32.mrb[73].mxu1 }
 0xbcc   : > { %v5256_v46 = vadd.f32 %v5255_v44, %v5254_v43  ;;  %v5257_v47 = vpop.f32.mrb[74].mxu1 }
 0xbcd   : > { %v5258_v48 = vpop.f32.mrb[75].mxu1 }
 0xbce   : > { %v4423_v52 = vadd.f32 %v5256_v46, %v4195_v49 }
 0xbda   : > { %v5276_v50 = vpop.f32.mrb[56].mxu0 }
 0xbdb   : > { %v5277_v51 = vpop.f32.mrb[57].mxu0 }
 0xbdc   : > { %v5278_v53 = vadd.f32 %v5277_v51, %v5276_v50  ;;  %v5279_v55 = vpop.f32.mrb[58].mxu0 }
 0xbdd   : > { %v5280_v56 = vpop.f32.mrb[59].mxu0 }
 0xbde   : > { %v4463_v57 = vadd.f32 %v5278_v53, %v4423_v52 }
 0xbe0   : > { %4468 = vst [vmem:[%s459_s19] sm:$0x1] %v4463_v57 }
 0xbe1   : > { %5867 = shalt.err (!%p5864_p3)
}
 0xbe2   : > { %s5868_s25 = scalar_lea.hbm %s7395_s20, 16  ;;  %s5872_s18 = scalar_lea.hbm %s7451_s14, 64 }
 0xbe3   : > { %p5869_p4 = scmp.ne.s32.totalorder %s7395_s20, %s5868_s25  ;;  %p5873_p9 = scmp.lt.u32.totalorder %s7395_s20, %s7451_s14 }
 0xbe4   : > { %p5874_p10 = scmp.lt.u32.totalorder %s5872_s18, %s5868_s25  ;;  %p5876_p12 = scmp.lt.u32.totalorder %s5868_s25, %s7395_s20 }
 0xbe5   : > { %p5870_p7 = pnand %p5869_p4, %p6034_p5 }
 0xbe6   : > { %p5875_p11 = por %p5874_p10, %p5873_p9 }
 0xbe7   : > { %p5871_p8 = pneg %p5870_p7 }
 0xbe8   : > { %p5877_p13 = por %p5876_p12, %p5875_p11 }
 0xbea   : > { %p5878_p0 = pnand %p5877_p13, %p5871_p8 }
 0xbec   : > { %5881 = shalt.err (!%p5878_p0)
}
 0xbed   : > { %5283 = dma.vmem_to_hbm [thread:$0]  (%p6034_p5), %s7397_s28, 16, %s7395_s20, %s4470_s15  }
 0xbee PF: > { %p5289_p1 = scmp.ge.s32.totalorder %s5916_s16, 2  ;;  %s4494_s17 = sand.u32 1, %s5904_s29  }
 0xbef   : > { %s4495_s26 = scalar_lea.sflag [#allocation3], %s4494_s17 }
 0xbf0   : > { %p5286_p2 = pnand %p5289_p1, %p6038_p6 }
 0xbf2   : > { %5899 = dma.done.wait (!%p5286_p2), %s4495_s26, 16  }
 0xbf3   : > { %5901 = vsyncadd (!%p5286_p2), %s4495_s26, 4294967280  ;;  %s7462_s16 = sld [smem:[#allocation6_spill]]  ;;  %s7463_s27 = sld [smem:[#allocation5_spill]] }
 0xbf4   : > { %s7464_s15 = sld [smem:[#allocation7_spill]]  ;;  %s7465_s29 = smov %s5908_s30 }
 0xbf9   : > { %p24_p3 = scmp.ge.s32.totalorder %s7462_s16, 6   ;;  %s7466_s30 = smov %s7463_s27 }
 0xbfb   :  { %26 = sbr.rel (!%p24_p3) target bundleno = 5 (0x5), region = 135 }
 0xc02   :  { %4499 = vsyncpa [#allocation3], 1 }
 0xc03   :  { %4501 = vsyncpa [#allocation3 + $0x1], 1 }

</bundles_post_ra>
